<compile_context>
chip_gen: v7x
topology: tpu7x:2x2x1
jax: 0.10.0
libtpu: 0.0.40
codegen_flags: <defaults>
</compile_context>

<pallas_src>
import jax
import jax.numpy as jnp
from jax.experimental import pallas as pl
from jax.experimental.pallas import tpu as pltpu

_LANE = 128
_SUBLANE = 8


def _fused_lstm_heads_kernel(
    x_ref,      # (T, Bp, Fp)   time-major, zero-padded input for this head
    wih0_ref,   # (Fp, 4H)
    whh0_ref,   # (H, 4H)
    b0_ref,     # (1, 4H)       b_ih_l0 + b_hh_l0
    wih1_ref,   # (H, 4H)
    whh1_ref,   # (H, 4H)
    b1_ref,     # (1, 4H)       b_ih_l1 + b_hh_l1
    wlin_ref,   # (2H, Np)      final Linear weight (pre-transposed, padded)
    blin_ref,   # (1, Np)
    out_ref,    # (Bp, Np)
):
  T, B, Fp = x_ref.shape
  H = whh0_ref.shape[0]

  # --- Hoisted layer-0 input projection: one big matmul, bias folded in. ---
  x_flat = x_ref[...].reshape(T * B, Fp)
  xproj = (jnp.dot(x_flat, wih0_ref[...], preferred_element_type=jnp.float32)
           + b0_ref[...])                              # (T*B, 4H)

  # Hoist weight loads and the layer-1 bias broadcast out of the time loop
  # (JAX does not CSE broadcast_in_dim inside unrolled loops).
  whh0 = whh0_ref[...]
  wih1 = wih1_ref[...]
  whh1 = whh1_ref[...]
  b1 = jnp.broadcast_to(b1_ref[...], (B, 4 * H))

  def lstm_cell(pre, h, c, whh):
    gates = pre + jnp.dot(h, whh, preferred_element_type=jnp.float32)
    sg = jax.nn.sigmoid(gates)                         # full 128-lane EUP pass
    th = jnp.tanh(gates)                               # full 128-lane EUP pass
    i = sg[:, 0 * H:1 * H]
    f = sg[:, 1 * H:2 * H]
    g = th[:, 2 * H:3 * H]
    o = sg[:, 3 * H:4 * H]
    c_new = f * c + i * g
    h_new = o * jnp.tanh(c_new)
    return h_new, c_new

  zeros = jnp.zeros((B, H), jnp.float32)
  h0, c0, h1, c1 = zeros, zeros, zeros, zeros

  # T is a compile-time constant: static unroll exposes all iterations to the
  # scheduler so layer-0 / layer-1 matmuls of adjacent steps can overlap.
  for t in range(T):
    pre0 = xproj[t * B:(t + 1) * B, :]                 # static sublane slice
    h0, c0 = lstm_cell(pre0, h0, c0, whh0)
    pre1 = jnp.dot(h0, wih1, preferred_element_type=jnp.float32) + b1
    h1, c1 = lstm_cell(pre1, h1, c1, whh1)

  # Final Linear on concat([h_l0, h_l1], -1) without materializing the concat:
  # split the (2H, Np) weight into two static halves.
  out = (jnp.dot(h0, wlin_ref[0:H, :], preferred_element_type=jnp.float32)
         + jnp.dot(h1, wlin_ref[H:2 * H, :], preferred_element_type=jnp.float32)
         + blin_ref[...])
  out_ref[...] = out.astype(out_ref.dtype)


def _pad_to(a, shape):
  pads = tuple((0, s - d) for d, s in zip(a.shape, shape))
  if all(p == (0, 0) for p in pads):
    return a
  return jnp.pad(a, pads)


def _init_lstm_params(key, input_size, hidden):
  """PyTorch nn.LSTM-style init, pre-transposed for the kernel."""
  k = 1.0 / jnp.sqrt(hidden)
  keys = jax.random.split(key, 8)

  def u(kk, shape):
    return jax.random.uniform(kk, shape, jnp.float32, minval=-k, maxval=k)

  w_ih_l0 = u(keys[0], (4 * hidden, input_size))
  w_hh_l0 = u(keys[1], (4 * hidden, hidden))
  b_ih_l0 = u(keys[2], (4 * hidden,))
  b_hh_l0 = u(keys[3], (4 * hidden,))
  w_ih_l1 = u(keys[4], (4 * hidden, hidden))
  w_hh_l1 = u(keys[5], (4 * hidden, hidden))
  b_ih_l1 = u(keys[6], (4 * hidden,))
  b_hh_l1 = u(keys[7], (4 * hidden,))
  return {
      "wih0": w_ih_l0.T, "whh0": w_hh_l0.T,
      "b0": (b_ih_l0 + b_hh_l0).reshape(1, -1),
      "wih1": w_ih_l1.T, "whh1": w_hh_l1.T,
      "b1": (b_ih_l1 + b_hh_l1).reshape(1, -1),
  }


def _init_linear_params(key, in_features, out_features):
  k = 1.0 / jnp.sqrt(in_features)
  kw, kb = jax.random.split(key)
  w = jax.random.uniform(kw, (out_features, in_features), jnp.float32,
                         minval=-k, maxval=k)
  b = jax.random.uniform(kb, (out_features,), jnp.float32, minval=-k, maxval=k)
  return {"w": w.T, "b": b.reshape(1, -1)}


def init_cmv_lstm_params(key, n_features1, n_features2, n_features3, n_hidden):
  keys = jax.random.split(key, 6)
  f_all = n_features1 + n_features2 + n_features3
  return {
      "lstm1": _init_lstm_params(keys[0], f_all, n_hidden),
      "lstm2": _init_lstm_params(keys[1], f_all, n_hidden),
      "lstm3": _init_lstm_params(keys[2], n_features3, n_hidden),
      "lin1": _init_linear_params(keys[3], 2 * n_hidden, n_features1),
      "lin2": _init_linear_params(keys[4], 2 * n_hidden, n_features2),
      "lin3": _init_linear_params(keys[5], 2 * n_hidden, n_features3),
  }


def cmv_lstm_forward(econs, trends, weathers, params, n_hidden):
  """Matches CMV_LSTM.forward with hidden states initialized to zeros."""
  B, T, _ = econs.shape
  H = n_hidden
  F1 = params["lin1"]["b"].shape[1]
  F2 = params["lin2"]["b"].shape[1]
  F3 = params["lin3"]["b"].shape[1]

  Bp = max(_SUBLANE, ((B + _SUBLANE - 1) // _SUBLANE) * _SUBLANE)
  Fp = _LANE   # feature dims (10 / 5) padded to one lane-dense 128 row
  Np = _LANE   # linear output dims (3 / 2 / 5) padded to one 128-lane row

  input1 = jnp.concatenate([econs, trends, weathers], axis=2)

  def prep_x(x_bt):                      # (B,T,F) -> (T,Bp,Fp), zero-padded
    x_tm = jnp.transpose(x_bt, (1, 0, 2)).astype(jnp.float32)
    return _pad_to(x_tm, (T, Bp, Fp))

  x_stacked = jnp.stack([prep_x(input1), prep_x(input1), prep_x(weathers)])

  heads = (("lstm1", "lin1"), ("lstm2", "lin2"), ("lstm3", "lin3"))

  def stack(getter, shape):
    return jnp.stack([_pad_to(getter(l, f), shape) for l, f in heads])

  wih0 = stack(lambda l, f: params[l]["wih0"], (Fp, 4 * H))
  whh0 = stack(lambda l, f: params[l]["whh0"], (H, 4 * H))
  b0 = stack(lambda l, f: params[l]["b0"], (1, 4 * H))
  wih1 = stack(lambda l, f: params[l]["wih1"], (H, 4 * H))
  whh1 = stack(lambda l, f: params[l]["whh1"], (H, 4 * H))
  b1 = stack(lambda l, f: params[l]["b1"], (1, 4 * H))
  wlin = stack(lambda l, f: params[f]["w"], (2 * H, Np))
  blin = stack(lambda l, f: params[f]["b"], (1, Np))

  def head_block(*dims):
    # Leading None squeezes the head axis out of the kernel Ref.
    return pl.BlockSpec((None,) + dims, lambda h: (h,) + (0,) * len(dims))

  out = pl.pallas_call(
      _fused_lstm_heads_kernel,
      out_shape=jax.ShapeDtypeStruct((3, Bp, Np), jnp.float32),
      grid=(3,),
      in_specs=[
          head_block(T, Bp, Fp),        # x
          head_block(Fp, 4 * H),        # wih0
          head_block(H, 4 * H),         # whh0
          head_block(1, 4 * H),         # b0
          head_block(H, 4 * H),         # wih1
          head_block(H, 4 * H),         # whh1
          head_block(1, 4 * H),         # b1
          head_block(2 * H, Np),        # wlin
          head_block(1, Np),            # blin
      ],
      out_specs=head_block(Bp, Np),
      compiler_params=pltpu.CompilerParams(
          dimension_semantics=("parallel",)),
  )(x_stacked, wih0, whh0, b0, wih1, whh1, b1, wlin, blin)

  return out[0, :B, :F1], out[1, :B, :F2], out[2, :B, :F3]


if __name__ == "__main__":
  B, T = 4, 8
  F1, F2, F3 = 3, 2, 5
  H = 32

  key = jax.random.PRNGKey(0)
  k_e, k_t, k_w, k_p = jax.random.split(key, 4)
  econs = jax.random.normal(k_e, (B, T, F1), jnp.float32)
  trends = jax.random.normal(k_t, (B, T, F2), jnp.float32)
  weathers = jax.random.normal(k_w, (B, T, F3), jnp.float32)

  params = init_cmv_lstm_params(k_p, F1, F2, F3, H)

  out1, out2, out3 = cmv_lstm_forward(econs, trends, weathers, params, H)
  (out1, out2, out3) = jax.block_until_ready((out1, out2, out3))

  assert out1.shape == (B, F1), out1.shape
  assert out2.shape == (B, F2), out2.shape
  assert out3.shape == (B, F3), out3.shape
  assert bool(jnp.all(jnp.isfinite(out1)))
  assert bool(jnp.all(jnp.isfinite(out2)))
  assert bool(jnp.all(jnp.isfinite(out3)))
  print("KERNEL_OK")
</pallas_src>

<mosaic_0001>
module attributes {stable_mosaic.version = 11 : i64} {
  func.func @_fused_lstm_heads_kernel(%arg0: i32, %arg1: memref<1x8x8x128xf32, #tpu.memory_space<vmem>>, %arg2: memref<1x128x128xf32, #tpu.memory_space<vmem>>, %arg3: memref<1x32x128xf32, #tpu.memory_space<vmem>>, %arg4: memref<1x1x128xf32, #tpu.memory_space<vmem>>, %arg5: memref<1x32x128xf32, #tpu.memory_space<vmem>>, %arg6: memref<1x32x128xf32, #tpu.memory_space<vmem>>, %arg7: memref<1x1x128xf32, #tpu.memory_space<vmem>>, %arg8: memref<1x64x128xf32, #tpu.memory_space<vmem>>, %arg9: memref<1x1x128xf32, #tpu.memory_space<vmem>>, %arg10: memref<1x8x128xf32, #tpu.memory_space<vmem>>) attributes {dimension_semantics = [#tpu.dimension_semantics<parallel>], iteration_bounds = array<i64: 3>, scalar_prefetch = 0 : i64, scratch_operands = 0 : i64, tpu.core_type = #tpu.core_type<tc>, window_params = [{transform_indices = @transform_0, window_bounds = array<i64: 1, 8, 8, 128>}, {transform_indices = @transform_1, window_bounds = array<i64: 1, 128, 128>}, {transform_indices = @transform_2, window_bounds = array<i64: 1, 32, 128>}, {transform_indices = @transform_3, window_bounds = array<i64: 1, 1, 128>}, {transform_indices = @transform_4, window_bounds = array<i64: 1, 32, 128>}, {transform_indices = @transform_5, window_bounds = array<i64: 1, 32, 128>}, {transform_indices = @transform_6, window_bounds = array<i64: 1, 1, 128>}, {transform_indices = @transform_7, window_bounds = array<i64: 1, 64, 128>}, {transform_indices = @transform_8, window_bounds = array<i64: 1, 1, 128>}, {transform_indices = @transform_9, window_bounds = array<i64: 1, 8, 128>}]} {
    %c0 = arith.constant 0 : index
    %c0_0 = arith.constant 0 : index
    %c0_1 = arith.constant 0 : index
    %c0_2 = arith.constant 0 : index
    %0 = vector.load %arg1[%c0, %c0_0, %c0_1, %c0_2] : memref<1x8x8x128xf32, #tpu.memory_space<vmem>>, vector<1x8x8x128xf32>
    %1 = vector.shape_cast %0 : vector<1x8x8x128xf32> to vector<8x8x128xf32>
    %2 = vector.shape_cast %1 : vector<8x8x128xf32> to vector<64x128xf32>
    %c0_3 = arith.constant 0 : index
    %c0_4 = arith.constant 0 : index
    %c0_5 = arith.constant 0 : index
    %3 = vector.load %arg2[%c0_3, %c0_4, %c0_5] : memref<1x128x128xf32, #tpu.memory_space<vmem>>, vector<1x128x128xf32>
    %4 = vector.shape_cast %3 : vector<1x128x128xf32> to vector<128x128xf32>
    %cst = arith.constant dense<0.000000e+00> : vector<64x128xf32>
    %5 = tpu.matmul %2, %4, %cst {dimension_numbers = #tpu.dot_dimension_numbers<[1], [0], [0], [1], [0, 0, 1, 1], [], []>} : vector<64x128xf32>, vector<128x128xf32>, vector<64x128xf32> -> vector<64x128xf32>
    %c0_6 = arith.constant 0 : index
    %c0_7 = arith.constant 0 : index
    %c0_8 = arith.constant 0 : index
    %6 = vector.load %arg4[%c0_6, %c0_7, %c0_8] : memref<1x1x128xf32, #tpu.memory_space<vmem>>, vector<1x1x128xf32>
    %7 = vector.shape_cast %6 : vector<1x1x128xf32> to vector<1x128xf32>
    %8 = vector.broadcast %7 : vector<1x128xf32> to vector<64x128xf32>
    %9 = arith.addf %5, %8 : vector<64x128xf32>
    %c0_9 = arith.constant 0 : index
    %c0_10 = arith.constant 0 : index
    %c0_11 = arith.constant 0 : index
    %10 = vector.load %arg3[%c0_9, %c0_10, %c0_11] : memref<1x32x128xf32, #tpu.memory_space<vmem>>, vector<1x32x128xf32>
    %11 = vector.shape_cast %10 : vector<1x32x128xf32> to vector<32x128xf32>
    %c0_12 = arith.constant 0 : index
    %c0_13 = arith.constant 0 : index
    %c0_14 = arith.constant 0 : index
    %12 = vector.load %arg5[%c0_12, %c0_13, %c0_14] : memref<1x32x128xf32, #tpu.memory_space<vmem>>, vector<1x32x128xf32>
    %13 = vector.shape_cast %12 : vector<1x32x128xf32> to vector<32x128xf32>
    %c0_15 = arith.constant 0 : index
    %c0_16 = arith.constant 0 : index
    %c0_17 = arith.constant 0 : index
    %14 = vector.load %arg6[%c0_15, %c0_16, %c0_17] : memref<1x32x128xf32, #tpu.memory_space<vmem>>, vector<1x32x128xf32>
    %15 = vector.shape_cast %14 : vector<1x32x128xf32> to vector<32x128xf32>
    %c0_18 = arith.constant 0 : index
    %c0_19 = arith.constant 0 : index
    %c0_20 = arith.constant 0 : index
    %16 = vector.load %arg7[%c0_18, %c0_19, %c0_20] : memref<1x1x128xf32, #tpu.memory_space<vmem>>, vector<1x1x128xf32>
    %17 = vector.shape_cast %16 : vector<1x1x128xf32> to vector<1x128xf32>
    %18 = vector.shape_cast %17 : vector<1x128xf32> to vector<1x128xf32>
    %19 = vector.broadcast %18 : vector<1x128xf32> to vector<8x128xf32>
    %cst_21 = arith.constant 0.000000e+00 : f32
    %20 = vector.broadcast %cst_21 : f32 to vector<8x32xf32>
    %21 = vector.extract_strided_slice %9 {offsets = [0, 0], sizes = [8, 128], strides = [1, 1]} : vector<64x128xf32> to vector<8x128xf32>
    %cst_22 = arith.constant dense<0.000000e+00> : vector<8x128xf32>
    %22 = tpu.matmul %20, %11, %cst_22 {dimension_numbers = #tpu.dot_dimension_numbers<[1], [0], [0], [1], [0, 0, 1, 1], [], []>} : vector<8x32xf32>, vector<32x128xf32>, vector<8x128xf32> -> vector<8x128xf32>
    %23 = arith.addf %21, %22 : vector<8x128xf32>
    %24 = arith.negf %23 : vector<8x128xf32>
    %25 = math.exp %24 : vector<8x128xf32>
    %cst_23 = arith.constant 1.000000e+00 : f32
    %26 = vector.broadcast %cst_23 : f32 to vector<8x128xf32>
    %27 = arith.addf %26, %25 : vector<8x128xf32>
    %28 = arith.divf %26, %27 : vector<8x128xf32>
    %29 = math.tanh %23 : vector<8x128xf32>
    %30 = vector.extract_strided_slice %28 {offsets = [0, 0], sizes = [8, 32], strides = [1, 1]} : vector<8x128xf32> to vector<8x32xf32>
    %31 = vector.extract_strided_slice %28 {offsets = [0, 32], sizes = [8, 32], strides = [1, 1]} : vector<8x128xf32> to vector<8x32xf32>
    %32 = vector.extract_strided_slice %29 {offsets = [0, 64], sizes = [8, 32], strides = [1, 1]} : vector<8x128xf32> to vector<8x32xf32>
    %33 = vector.extract_strided_slice %28 {offsets = [0, 96], sizes = [8, 32], strides = [1, 1]} : vector<8x128xf32> to vector<8x32xf32>
    %34 = arith.mulf %31, %20 : vector<8x32xf32>
    %35 = arith.mulf %30, %32 : vector<8x32xf32>
    %36 = arith.addf %34, %35 : vector<8x32xf32>
    %37 = math.tanh %36 : vector<8x32xf32>
    %38 = arith.mulf %33, %37 : vector<8x32xf32>
    %cst_24 = arith.constant dense<0.000000e+00> : vector<8x128xf32>
    %39 = tpu.matmul %38, %13, %cst_24 {dimension_numbers = #tpu.dot_dimension_numbers<[1], [0], [0], [1], [0, 0, 1, 1], [], []>} : vector<8x32xf32>, vector<32x128xf32>, vector<8x128xf32> -> vector<8x128xf32>
    %40 = arith.addf %39, %19 : vector<8x128xf32>
    %cst_25 = arith.constant dense<0.000000e+00> : vector<8x128xf32>
    %41 = tpu.matmul %20, %15, %cst_25 {dimension_numbers = #tpu.dot_dimension_numbers<[1], [0], [0], [1], [0, 0, 1, 1], [], []>} : vector<8x32xf32>, vector<32x128xf32>, vector<8x128xf32> -> vector<8x128xf32>
    %42 = arith.addf %40, %41 : vector<8x128xf32>
    %43 = arith.negf %42 : vector<8x128xf32>
    %44 = math.exp %43 : vector<8x128xf32>
    %cst_26 = arith.constant 1.000000e+00 : f32
    %45 = vector.broadcast %cst_26 : f32 to vector<8x128xf32>
    %46 = arith.addf %45, %44 : vector<8x128xf32>
    %47 = arith.divf %45, %46 : vector<8x128xf32>
    %48 = math.tanh %42 : vector<8x128xf32>
    %49 = vector.extract_strided_slice %47 {offsets = [0, 0], sizes = [8, 32], strides = [1, 1]} : vector<8x128xf32> to vector<8x32xf32>
    %50 = vector.extract_strided_slice %47 {offsets = [0, 32], sizes = [8, 32], strides = [1, 1]} : vector<8x128xf32> to vector<8x32xf32>
    %51 = vector.extract_strided_slice %48 {offsets = [0, 64], sizes = [8, 32], strides = [1, 1]} : vector<8x128xf32> to vector<8x32xf32>
    %52 = vector.extract_strided_slice %47 {offsets = [0, 96], sizes = [8, 32], strides = [1, 1]} : vector<8x128xf32> to vector<8x32xf32>
    %53 = arith.mulf %50, %20 : vector<8x32xf32>
    %54 = arith.mulf %49, %51 : vector<8x32xf32>
    %55 = arith.addf %53, %54 : vector<8x32xf32>
    %56 = math.tanh %55 : vector<8x32xf32>
    %57 = arith.mulf %52, %56 : vector<8x32xf32>
    %58 = vector.extract_strided_slice %9 {offsets = [8, 0], sizes = [8, 128], strides = [1, 1]} : vector<64x128xf32> to vector<8x128xf32>
    %cst_27 = arith.constant dense<0.000000e+00> : vector<8x128xf32>
    %59 = tpu.matmul %38, %11, %cst_27 {dimension_numbers = #tpu.dot_dimension_numbers<[1], [0], [0], [1], [0, 0, 1, 1], [], []>} : vector<8x32xf32>, vector<32x128xf32>, vector<8x128xf32> -> vector<8x128xf32>
    %60 = arith.addf %58, %59 : vector<8x128xf32>
    %61 = arith.negf %60 : vector<8x128xf32>
    %62 = math.exp %61 : vector<8x128xf32>
    %cst_28 = arith.constant 1.000000e+00 : f32
    %63 = vector.broadcast %cst_28 : f32 to vector<8x128xf32>
    %64 = arith.addf %63, %62 : vector<8x128xf32>
    %65 = arith.divf %63, %64 : vector<8x128xf32>
    %66 = math.tanh %60 : vector<8x128xf32>
    %67 = vector.extract_strided_slice %65 {offsets = [0, 0], sizes = [8, 32], strides = [1, 1]} : vector<8x128xf32> to vector<8x32xf32>
    %68 = vector.extract_strided_slice %65 {offsets = [0, 32], sizes = [8, 32], strides = [1, 1]} : vector<8x128xf32> to vector<8x32xf32>
    %69 = vector.extract_strided_slice %66 {offsets = [0, 64], sizes = [8, 32], strides = [1, 1]} : vector<8x128xf32> to vector<8x32xf32>
    %70 = vector.extract_strided_slice %65 {offsets = [0, 96], sizes = [8, 32], strides = [1, 1]} : vector<8x128xf32> to vector<8x32xf32>
    %71 = arith.mulf %68, %36 : vector<8x32xf32>
    %72 = arith.mulf %67, %69 : vector<8x32xf32>
    %73 = arith.addf %71, %72 : vector<8x32xf32>
    %74 = math.tanh %73 : vector<8x32xf32>
    %75 = arith.mulf %70, %74 : vector<8x32xf32>
    %cst_29 = arith.constant dense<0.000000e+00> : vector<8x128xf32>
    %76 = tpu.matmul %75, %13, %cst_29 {dimension_numbers = #tpu.dot_dimension_numbers<[1], [0], [0], [1], [0, 0, 1, 1], [], []>} : vector<8x32xf32>, vector<32x128xf32>, vector<8x128xf32> -> vector<8x128xf32>
    %77 = arith.addf %76, %19 : vector<8x128xf32>
    %cst_30 = arith.constant dense<0.000000e+00> : vector<8x128xf32>
    %78 = tpu.matmul %57, %15, %cst_30 {dimension_numbers = #tpu.dot_dimension_numbers<[1], [0], [0], [1], [0, 0, 1, 1], [], []>} : vector<8x32xf32>, vector<32x128xf32>, vector<8x128xf32> -> vector<8x128xf32>
    %79 = arith.addf %77, %78 : vector<8x128xf32>
    %80 = arith.negf %79 : vector<8x128xf32>
    %81 = math.exp %80 : vector<8x128xf32>
    %cst_31 = arith.constant 1.000000e+00 : f32
    %82 = vector.broadcast %cst_31 : f32 to vector<8x128xf32>
    %83 = arith.addf %82, %81 : vector<8x128xf32>
    %84 = arith.divf %82, %83 : vector<8x128xf32>
    %85 = math.tanh %79 : vector<8x128xf32>
    %86 = vector.extract_strided_slice %84 {offsets = [0, 0], sizes = [8, 32], strides = [1, 1]} : vector<8x128xf32> to vector<8x32xf32>
    %87 = vector.extract_strided_slice %84 {offsets = [0, 32], sizes = [8, 32], strides = [1, 1]} : vector<8x128xf32> to vector<8x32xf32>
    %88 = vector.extract_strided_slice %85 {offsets = [0, 64], sizes = [8, 32], strides = [1, 1]} : vector<8x128xf32> to vector<8x32xf32>
    %89 = vector.extract_strided_slice %84 {offsets = [0, 96], sizes = [8, 32], strides = [1, 1]} : vector<8x128xf32> to vector<8x32xf32>
    %90 = arith.mulf %87, %55 : vector<8x32xf32>
    %91 = arith.mulf %86, %88 : vector<8x32xf32>
    %92 = arith.addf %90, %91 : vector<8x32xf32>
    %93 = math.tanh %92 : vector<8x32xf32>
    %94 = arith.mulf %89, %93 : vector<8x32xf32>
    %95 = vector.extract_strided_slice %9 {offsets = [16, 0], sizes = [8, 128], strides = [1, 1]} : vector<64x128xf32> to vector<8x128xf32>
    %cst_32 = arith.constant dense<0.000000e+00> : vector<8x128xf32>
    %96 = tpu.matmul %75, %11, %cst_32 {dimension_numbers = #tpu.dot_dimension_numbers<[1], [0], [0], [1], [0, 0, 1, 1], [], []>} : vector<8x32xf32>, vector<32x128xf32>, vector<8x128xf32> -> vector<8x128xf32>
    %97 = arith.addf %95, %96 : vector<8x128xf32>
    %98 = arith.negf %97 : vector<8x128xf32>
    %99 = math.exp %98 : vector<8x128xf32>
    %cst_33 = arith.constant 1.000000e+00 : f32
    %100 = vector.broadcast %cst_33 : f32 to vector<8x128xf32>
    %101 = arith.addf %100, %99 : vector<8x128xf32>
    %102 = arith.divf %100, %101 : vector<8x128xf32>
    %103 = math.tanh %97 : vector<8x128xf32>
    %104 = vector.extract_strided_slice %102 {offsets = [0, 0], sizes = [8, 32], strides = [1, 1]} : vector<8x128xf32> to vector<8x32xf32>
    %105 = vector.extract_strided_slice %102 {offsets = [0, 32], sizes = [8, 32], strides = [1, 1]} : vector<8x128xf32> to vector<8x32xf32>
    %106 = vector.extract_strided_slice %103 {offsets = [0, 64], sizes = [8, 32], strides = [1, 1]} : vector<8x128xf32> to vector<8x32xf32>
    %107 = vector.extract_strided_slice %102 {offsets = [0, 96], sizes = [8, 32], strides = [1, 1]} : vector<8x128xf32> to vector<8x32xf32>
    %108 = arith.mulf %105, %73 : vector<8x32xf32>
    %109 = arith.mulf %104, %106 : vector<8x32xf32>
    %110 = arith.addf %108, %109 : vector<8x32xf32>
    %111 = math.tanh %110 : vector<8x32xf32>
    %112 = arith.mulf %107, %111 : vector<8x32xf32>
    %cst_34 = arith.constant dense<0.000000e+00> : vector<8x128xf32>
    %113 = tpu.matmul %112, %13, %cst_34 {dimension_numbers = #tpu.dot_dimension_numbers<[1], [0], [0], [1], [0, 0, 1, 1], [], []>} : vector<8x32xf32>, vector<32x128xf32>, vector<8x128xf32> -> vector<8x128xf32>
    %114 = arith.addf %113, %19 : vector<8x128xf32>
    %cst_35 = arith.constant dense<0.000000e+00> : vector<8x128xf32>
    %115 = tpu.matmul %94, %15, %cst_35 {dimension_numbers = #tpu.dot_dimension_numbers<[1], [0], [0], [1], [0, 0, 1, 1], [], []>} : vector<8x32xf32>, vector<32x128xf32>, vector<8x128xf32> -> vector<8x128xf32>
    %116 = arith.addf %114, %115 : vector<8x128xf32>
    %117 = arith.negf %116 : vector<8x128xf32>
    %118 = math.exp %117 : vector<8x128xf32>
    %cst_36 = arith.constant 1.000000e+00 : f32
    %119 = vector.broadcast %cst_36 : f32 to vector<8x128xf32>
    %120 = arith.addf %119, %118 : vector<8x128xf32>
    %121 = arith.divf %119, %120 : vector<8x128xf32>
    %122 = math.tanh %116 : vector<8x128xf32>
    %123 = vector.extract_strided_slice %121 {offsets = [0, 0], sizes = [8, 32], strides = [1, 1]} : vector<8x128xf32> to vector<8x32xf32>
    %124 = vector.extract_strided_slice %121 {offsets = [0, 32], sizes = [8, 32], strides = [1, 1]} : vector<8x128xf32> to vector<8x32xf32>
    %125 = vector.extract_strided_slice %122 {offsets = [0, 64], sizes = [8, 32], strides = [1, 1]} : vector<8x128xf32> to vector<8x32xf32>
    %126 = vector.extract_strided_slice %121 {offsets = [0, 96], sizes = [8, 32], strides = [1, 1]} : vector<8x128xf32> to vector<8x32xf32>
    %127 = arith.mulf %124, %92 : vector<8x32xf32>
    %128 = arith.mulf %123, %125 : vector<8x32xf32>
    %129 = arith.addf %127, %128 : vector<8x32xf32>
    %130 = math.tanh %129 : vector<8x32xf32>
    %131 = arith.mulf %126, %130 : vector<8x32xf32>
    %132 = vector.extract_strided_slice %9 {offsets = [24, 0], sizes = [8, 128], strides = [1, 1]} : vector<64x128xf32> to vector<8x128xf32>
    %cst_37 = arith.constant dense<0.000000e+00> : vector<8x128xf32>
    %133 = tpu.matmul %112, %11, %cst_37 {dimension_numbers = #tpu.dot_dimension_numbers<[1], [0], [0], [1], [0, 0, 1, 1], [], []>} : vector<8x32xf32>, vector<32x128xf32>, vector<8x128xf32> -> vector<8x128xf32>
    %134 = arith.addf %132, %133 : vector<8x128xf32>
    %135 = arith.negf %134 : vector<8x128xf32>
    %136 = math.exp %135 : vector<8x128xf32>
    %cst_38 = arith.constant 1.000000e+00 : f32
    %137 = vector.broadcast %cst_38 : f32 to vector<8x128xf32>
    %138 = arith.addf %137, %136 : vector<8x128xf32>
    %139 = arith.divf %137, %138 : vector<8x128xf32>
    %140 = math.tanh %134 : vector<8x128xf32>
    %141 = vector.extract_strided_slice %139 {offsets = [0, 0], sizes = [8, 32], strides = [1, 1]} : vector<8x128xf32> to vector<8x32xf32>
    %142 = vector.extract_strided_slice %139 {offsets = [0, 32], sizes = [8, 32], strides = [1, 1]} : vector<8x128xf32> to vector<8x32xf32>
    %143 = vector.extract_strided_slice %140 {offsets = [0, 64], sizes = [8, 32], strides = [1, 1]} : vector<8x128xf32> to vector<8x32xf32>
    %144 = vector.extract_strided_slice %139 {offsets = [0, 96], sizes = [8, 32], strides = [1, 1]} : vector<8x128xf32> to vector<8x32xf32>
    %145 = arith.mulf %142, %110 : vector<8x32xf32>
    %146 = arith.mulf %141, %143 : vector<8x32xf32>
    %147 = arith.addf %145, %146 : vector<8x32xf32>
    %148 = math.tanh %147 : vector<8x32xf32>
    %149 = arith.mulf %144, %148 : vector<8x32xf32>
    %cst_39 = arith.constant dense<0.000000e+00> : vector<8x128xf32>
    %150 = tpu.matmul %149, %13, %cst_39 {dimension_numbers = #tpu.dot_dimension_numbers<[1], [0], [0], [1], [0, 0, 1, 1], [], []>} : vector<8x32xf32>, vector<32x128xf32>, vector<8x128xf32> -> vector<8x128xf32>
    %151 = arith.addf %150, %19 : vector<8x128xf32>
    %cst_40 = arith.constant dense<0.000000e+00> : vector<8x128xf32>
    %152 = tpu.matmul %131, %15, %cst_40 {dimension_numbers = #tpu.dot_dimension_numbers<[1], [0], [0], [1], [0, 0, 1, 1], [], []>} : vector<8x32xf32>, vector<32x128xf32>, vector<8x128xf32> -> vector<8x128xf32>
    %153 = arith.addf %151, %152 : vector<8x128xf32>
    %154 = arith.negf %153 : vector<8x128xf32>
    %155 = math.exp %154 : vector<8x128xf32>
    %cst_41 = arith.constant 1.000000e+00 : f32
    %156 = vector.broadcast %cst_41 : f32 to vector<8x128xf32>
    %157 = arith.addf %156, %155 : vector<8x128xf32>
    %158 = arith.divf %156, %157 : vector<8x128xf32>
    %159 = math.tanh %153 : vector<8x128xf32>
    %160 = vector.extract_strided_slice %158 {offsets = [0, 0], sizes = [8, 32], strides = [1, 1]} : vector<8x128xf32> to vector<8x32xf32>
    %161 = vector.extract_strided_slice %158 {offsets = [0, 32], sizes = [8, 32], strides = [1, 1]} : vector<8x128xf32> to vector<8x32xf32>
    %162 = vector.extract_strided_slice %159 {offsets = [0, 64], sizes = [8, 32], strides = [1, 1]} : vector<8x128xf32> to vector<8x32xf32>
    %163 = vector.extract_strided_slice %158 {offsets = [0, 96], sizes = [8, 32], strides = [1, 1]} : vector<8x128xf32> to vector<8x32xf32>
    %164 = arith.mulf %161, %129 : vector<8x32xf32>
    %165 = arith.mulf %160, %162 : vector<8x32xf32>
    %166 = arith.addf %164, %165 : vector<8x32xf32>
    %167 = math.tanh %166 : vector<8x32xf32>
    %168 = arith.mulf %163, %167 : vector<8x32xf32>
    %169 = vector.extract_strided_slice %9 {offsets = [32, 0], sizes = [8, 128], strides = [1, 1]} : vector<64x128xf32> to vector<8x128xf32>
    %cst_42 = arith.constant dense<0.000000e+00> : vector<8x128xf32>
    %170 = tpu.matmul %149, %11, %cst_42 {dimension_numbers = #tpu.dot_dimension_numbers<[1], [0], [0], [1], [0, 0, 1, 1], [], []>} : vector<8x32xf32>, vector<32x128xf32>, vector<8x128xf32> -> vector<8x128xf32>
    %171 = arith.addf %169, %170 : vector<8x128xf32>
    %172 = arith.negf %171 : vector<8x128xf32>
    %173 = math.exp %172 : vector<8x128xf32>
    %cst_43 = arith.constant 1.000000e+00 : f32
    %174 = vector.broadcast %cst_43 : f32 to vector<8x128xf32>
    %175 = arith.addf %174, %173 : vector<8x128xf32>
    %176 = arith.divf %174, %175 : vector<8x128xf32>
    %177 = math.tanh %171 : vector<8x128xf32>
    %178 = vector.extract_strided_slice %176 {offsets = [0, 0], sizes = [8, 32], strides = [1, 1]} : vector<8x128xf32> to vector<8x32xf32>
    %179 = vector.extract_strided_slice %176 {offsets = [0, 32], sizes = [8, 32], strides = [1, 1]} : vector<8x128xf32> to vector<8x32xf32>
    %180 = vector.extract_strided_slice %177 {offsets = [0, 64], sizes = [8, 32], strides = [1, 1]} : vector<8x128xf32> to vector<8x32xf32>
    %181 = vector.extract_strided_slice %176 {offsets = [0, 96], sizes = [8, 32], strides = [1, 1]} : vector<8x128xf32> to vector<8x32xf32>
    %182 = arith.mulf %179, %147 : vector<8x32xf32>
    %183 = arith.mulf %178, %180 : vector<8x32xf32>
    %184 = arith.addf %182, %183 : vector<8x32xf32>
    %185 = math.tanh %184 : vector<8x32xf32>
    %186 = arith.mulf %181, %185 : vector<8x32xf32>
    %cst_44 = arith.constant dense<0.000000e+00> : vector<8x128xf32>
    %187 = tpu.matmul %186, %13, %cst_44 {dimension_numbers = #tpu.dot_dimension_numbers<[1], [0], [0], [1], [0, 0, 1, 1], [], []>} : vector<8x32xf32>, vector<32x128xf32>, vector<8x128xf32> -> vector<8x128xf32>
    %188 = arith.addf %187, %19 : vector<8x128xf32>
    %cst_45 = arith.constant dense<0.000000e+00> : vector<8x128xf32>
    %189 = tpu.matmul %168, %15, %cst_45 {dimension_numbers = #tpu.dot_dimension_numbers<[1], [0], [0], [1], [0, 0, 1, 1], [], []>} : vector<8x32xf32>, vector<32x128xf32>, vector<8x128xf32> -> vector<8x128xf32>
    %190 = arith.addf %188, %189 : vector<8x128xf32>
    %191 = arith.negf %190 : vector<8x128xf32>
    %192 = math.exp %191 : vector<8x128xf32>
    %cst_46 = arith.constant 1.000000e+00 : f32
    %193 = vector.broadcast %cst_46 : f32 to vector<8x128xf32>
    %194 = arith.addf %193, %192 : vector<8x128xf32>
    %195 = arith.divf %193, %194 : vector<8x128xf32>
    %196 = math.tanh %190 : vector<8x128xf32>
    %197 = vector.extract_strided_slice %195 {offsets = [0, 0], sizes = [8, 32], strides = [1, 1]} : vector<8x128xf32> to vector<8x32xf32>
    %198 = vector.extract_strided_slice %195 {offsets = [0, 32], sizes = [8, 32], strides = [1, 1]} : vector<8x128xf32> to vector<8x32xf32>
    %199 = vector.extract_strided_slice %196 {offsets = [0, 64], sizes = [8, 32], strides = [1, 1]} : vector<8x128xf32> to vector<8x32xf32>
    %200 = vector.extract_strided_slice %195 {offsets = [0, 96], sizes = [8, 32], strides = [1, 1]} : vector<8x128xf32> to vector<8x32xf32>
    %201 = arith.mulf %198, %166 : vector<8x32xf32>
    %202 = arith.mulf %197, %199 : vector<8x32xf32>
    %203 = arith.addf %201, %202 : vector<8x32xf32>
    %204 = math.tanh %203 : vector<8x32xf32>
    %205 = arith.mulf %200, %204 : vector<8x32xf32>
    %206 = vector.extract_strided_slice %9 {offsets = [40, 0], sizes = [8, 128], strides = [1, 1]} : vector<64x128xf32> to vector<8x128xf32>
    %cst_47 = arith.constant dense<0.000000e+00> : vector<8x128xf32>
    %207 = tpu.matmul %186, %11, %cst_47 {dimension_numbers = #tpu.dot_dimension_numbers<[1], [0], [0], [1], [0, 0, 1, 1], [], []>} : vector<8x32xf32>, vector<32x128xf32>, vector<8x128xf32> -> vector<8x128xf32>
    %208 = arith.addf %206, %207 : vector<8x128xf32>
    %209 = arith.negf %208 : vector<8x128xf32>
    %210 = math.exp %209 : vector<8x128xf32>
    %cst_48 = arith.constant 1.000000e+00 : f32
    %211 = vector.broadcast %cst_48 : f32 to vector<8x128xf32>
    %212 = arith.addf %211, %210 : vector<8x128xf32>
    %213 = arith.divf %211, %212 : vector<8x128xf32>
    %214 = math.tanh %208 : vector<8x128xf32>
    %215 = vector.extract_strided_slice %213 {offsets = [0, 0], sizes = [8, 32], strides = [1, 1]} : vector<8x128xf32> to vector<8x32xf32>
    %216 = vector.extract_strided_slice %213 {offsets = [0, 32], sizes = [8, 32], strides = [1, 1]} : vector<8x128xf32> to vector<8x32xf32>
    %217 = vector.extract_strided_slice %214 {offsets = [0, 64], sizes = [8, 32], strides = [1, 1]} : vector<8x128xf32> to vector<8x32xf32>
    %218 = vector.extract_strided_slice %213 {offsets = [0, 96], sizes = [8, 32], strides = [1, 1]} : vector<8x128xf32> to vector<8x32xf32>
    %219 = arith.mulf %216, %184 : vector<8x32xf32>
    %220 = arith.mulf %215, %217 : vector<8x32xf32>
    %221 = arith.addf %219, %220 : vector<8x32xf32>
    %222 = math.tanh %221 : vector<8x32xf32>
    %223 = arith.mulf %218, %222 : vector<8x32xf32>
    %cst_49 = arith.constant dense<0.000000e+00> : vector<8x128xf32>
    %224 = tpu.matmul %223, %13, %cst_49 {dimension_numbers = #tpu.dot_dimension_numbers<[1], [0], [0], [1], [0, 0, 1, 1], [], []>} : vector<8x32xf32>, vector<32x128xf32>, vector<8x128xf32> -> vector<8x128xf32>
    %225 = arith.addf %224, %19 : vector<8x128xf32>
    %cst_50 = arith.constant dense<0.000000e+00> : vector<8x128xf32>
    %226 = tpu.matmul %205, %15, %cst_50 {dimension_numbers = #tpu.dot_dimension_numbers<[1], [0], [0], [1], [0, 0, 1, 1], [], []>} : vector<8x32xf32>, vector<32x128xf32>, vector<8x128xf32> -> vector<8x128xf32>
    %227 = arith.addf %225, %226 : vector<8x128xf32>
    %228 = arith.negf %227 : vector<8x128xf32>
    %229 = math.exp %228 : vector<8x128xf32>
    %cst_51 = arith.constant 1.000000e+00 : f32
    %230 = vector.broadcast %cst_51 : f32 to vector<8x128xf32>
    %231 = arith.addf %230, %229 : vector<8x128xf32>
    %232 = arith.divf %230, %231 : vector<8x128xf32>
    %233 = math.tanh %227 : vector<8x128xf32>
    %234 = vector.extract_strided_slice %232 {offsets = [0, 0], sizes = [8, 32], strides = [1, 1]} : vector<8x128xf32> to vector<8x32xf32>
    %235 = vector.extract_strided_slice %232 {offsets = [0, 32], sizes = [8, 32], strides = [1, 1]} : vector<8x128xf32> to vector<8x32xf32>
    %236 = vector.extract_strided_slice %233 {offsets = [0, 64], sizes = [8, 32], strides = [1, 1]} : vector<8x128xf32> to vector<8x32xf32>
    %237 = vector.extract_strided_slice %232 {offsets = [0, 96], sizes = [8, 32], strides = [1, 1]} : vector<8x128xf32> to vector<8x32xf32>
    %238 = arith.mulf %235, %203 : vector<8x32xf32>
    %239 = arith.mulf %234, %236 : vector<8x32xf32>
    %240 = arith.addf %238, %239 : vector<8x32xf32>
    %241 = math.tanh %240 : vector<8x32xf32>
    %242 = arith.mulf %237, %241 : vector<8x32xf32>
    %243 = vector.extract_strided_slice %9 {offsets = [48, 0], sizes = [8, 128], strides = [1, 1]} : vector<64x128xf32> to vector<8x128xf32>
    %cst_52 = arith.constant dense<0.000000e+00> : vector<8x128xf32>
    %244 = tpu.matmul %223, %11, %cst_52 {dimension_numbers = #tpu.dot_dimension_numbers<[1], [0], [0], [1], [0, 0, 1, 1], [], []>} : vector<8x32xf32>, vector<32x128xf32>, vector<8x128xf32> -> vector<8x128xf32>
    %245 = arith.addf %243, %244 : vector<8x128xf32>
    %246 = arith.negf %245 : vector<8x128xf32>
    %247 = math.exp %246 : vector<8x128xf32>
    %cst_53 = arith.constant 1.000000e+00 : f32
    %248 = vector.broadcast %cst_53 : f32 to vector<8x128xf32>
    %249 = arith.addf %248, %247 : vector<8x128xf32>
    %250 = arith.divf %248, %249 : vector<8x128xf32>
    %251 = math.tanh %245 : vector<8x128xf32>
    %252 = vector.extract_strided_slice %250 {offsets = [0, 0], sizes = [8, 32], strides = [1, 1]} : vector<8x128xf32> to vector<8x32xf32>
    %253 = vector.extract_strided_slice %250 {offsets = [0, 32], sizes = [8, 32], strides = [1, 1]} : vector<8x128xf32> to vector<8x32xf32>
    %254 = vector.extract_strided_slice %251 {offsets = [0, 64], sizes = [8, 32], strides = [1, 1]} : vector<8x128xf32> to vector<8x32xf32>
    %255 = vector.extract_strided_slice %250 {offsets = [0, 96], sizes = [8, 32], strides = [1, 1]} : vector<8x128xf32> to vector<8x32xf32>
    %256 = arith.mulf %253, %221 : vector<8x32xf32>
    %257 = arith.mulf %252, %254 : vector<8x32xf32>
    %258 = arith.addf %256, %257 : vector<8x32xf32>
    %259 = math.tanh %258 : vector<8x32xf32>
    %260 = arith.mulf %255, %259 : vector<8x32xf32>
    %cst_54 = arith.constant dense<0.000000e+00> : vector<8x128xf32>
    %261 = tpu.matmul %260, %13, %cst_54 {dimension_numbers = #tpu.dot_dimension_numbers<[1], [0], [0], [1], [0, 0, 1, 1], [], []>} : vector<8x32xf32>, vector<32x128xf32>, vector<8x128xf32> -> vector<8x128xf32>
    %262 = arith.addf %261, %19 : vector<8x128xf32>
    %cst_55 = arith.constant dense<0.000000e+00> : vector<8x128xf32>
    %263 = tpu.matmul %242, %15, %cst_55 {dimension_numbers = #tpu.dot_dimension_numbers<[1], [0], [0], [1], [0, 0, 1, 1], [], []>} : vector<8x32xf32>, vector<32x128xf32>, vector<8x128xf32> -> vector<8x128xf32>
    %264 = arith.addf %262, %263 : vector<8x128xf32>
    %265 = arith.negf %264 : vector<8x128xf32>
    %266 = math.exp %265 : vector<8x128xf32>
    %cst_56 = arith.constant 1.000000e+00 : f32
    %267 = vector.broadcast %cst_56 : f32 to vector<8x128xf32>
    %268 = arith.addf %267, %266 : vector<8x128xf32>
    %269 = arith.divf %267, %268 : vector<8x128xf32>
    %270 = math.tanh %264 : vector<8x128xf32>
    %271 = vector.extract_strided_slice %269 {offsets = [0, 0], sizes = [8, 32], strides = [1, 1]} : vector<8x128xf32> to vector<8x32xf32>
    %272 = vector.extract_strided_slice %269 {offsets = [0, 32], sizes = [8, 32], strides = [1, 1]} : vector<8x128xf32> to vector<8x32xf32>
    %273 = vector.extract_strided_slice %270 {offsets = [0, 64], sizes = [8, 32], strides = [1, 1]} : vector<8x128xf32> to vector<8x32xf32>
    %274 = vector.extract_strided_slice %269 {offsets = [0, 96], sizes = [8, 32], strides = [1, 1]} : vector<8x128xf32> to vector<8x32xf32>
    %275 = arith.mulf %272, %240 : vector<8x32xf32>
    %276 = arith.mulf %271, %273 : vector<8x32xf32>
    %277 = arith.addf %275, %276 : vector<8x32xf32>
    %278 = math.tanh %277 : vector<8x32xf32>
    %279 = arith.mulf %274, %278 : vector<8x32xf32>
    %280 = vector.extract_strided_slice %9 {offsets = [56, 0], sizes = [8, 128], strides = [1, 1]} : vector<64x128xf32> to vector<8x128xf32>
    %cst_57 = arith.constant dense<0.000000e+00> : vector<8x128xf32>
    %281 = tpu.matmul %260, %11, %cst_57 {dimension_numbers = #tpu.dot_dimension_numbers<[1], [0], [0], [1], [0, 0, 1, 1], [], []>} : vector<8x32xf32>, vector<32x128xf32>, vector<8x128xf32> -> vector<8x128xf32>
    %282 = arith.addf %280, %281 : vector<8x128xf32>
    %283 = arith.negf %282 : vector<8x128xf32>
    %284 = math.exp %283 : vector<8x128xf32>
    %cst_58 = arith.constant 1.000000e+00 : f32
    %285 = vector.broadcast %cst_58 : f32 to vector<8x128xf32>
    %286 = arith.addf %285, %284 : vector<8x128xf32>
    %287 = arith.divf %285, %286 : vector<8x128xf32>
    %288 = math.tanh %282 : vector<8x128xf32>
    %289 = vector.extract_strided_slice %287 {offsets = [0, 0], sizes = [8, 32], strides = [1, 1]} : vector<8x128xf32> to vector<8x32xf32>
    %290 = vector.extract_strided_slice %287 {offsets = [0, 32], sizes = [8, 32], strides = [1, 1]} : vector<8x128xf32> to vector<8x32xf32>
    %291 = vector.extract_strided_slice %288 {offsets = [0, 64], sizes = [8, 32], strides = [1, 1]} : vector<8x128xf32> to vector<8x32xf32>
    %292 = vector.extract_strided_slice %287 {offsets = [0, 96], sizes = [8, 32], strides = [1, 1]} : vector<8x128xf32> to vector<8x32xf32>
    %293 = arith.mulf %290, %258 : vector<8x32xf32>
    %294 = arith.mulf %289, %291 : vector<8x32xf32>
    %295 = arith.addf %293, %294 : vector<8x32xf32>
    %296 = math.tanh %295 : vector<8x32xf32>
    %297 = arith.mulf %292, %296 : vector<8x32xf32>
    %cst_59 = arith.constant dense<0.000000e+00> : vector<8x128xf32>
    %298 = tpu.matmul %297, %13, %cst_59 {dimension_numbers = #tpu.dot_dimension_numbers<[1], [0], [0], [1], [0, 0, 1, 1], [], []>} : vector<8x32xf32>, vector<32x128xf32>, vector<8x128xf32> -> vector<8x128xf32>
    %299 = arith.addf %298, %19 : vector<8x128xf32>
    %cst_60 = arith.constant dense<0.000000e+00> : vector<8x128xf32>
    %300 = tpu.matmul %279, %15, %cst_60 {dimension_numbers = #tpu.dot_dimension_numbers<[1], [0], [0], [1], [0, 0, 1, 1], [], []>} : vector<8x32xf32>, vector<32x128xf32>, vector<8x128xf32> -> vector<8x128xf32>
    %301 = arith.addf %299, %300 : vector<8x128xf32>
    %302 = arith.negf %301 : vector<8x128xf32>
    %303 = math.exp %302 : vector<8x128xf32>
    %cst_61 = arith.constant 1.000000e+00 : f32
    %304 = vector.broadcast %cst_61 : f32 to vector<8x128xf32>
    %305 = arith.addf %304, %303 : vector<8x128xf32>
    %306 = arith.divf %304, %305 : vector<8x128xf32>
    %307 = math.tanh %301 : vector<8x128xf32>
    %308 = vector.extract_strided_slice %306 {offsets = [0, 0], sizes = [8, 32], strides = [1, 1]} : vector<8x128xf32> to vector<8x32xf32>
    %309 = vector.extract_strided_slice %306 {offsets = [0, 32], sizes = [8, 32], strides = [1, 1]} : vector<8x128xf32> to vector<8x32xf32>
    %310 = vector.extract_strided_slice %307 {offsets = [0, 64], sizes = [8, 32], strides = [1, 1]} : vector<8x128xf32> to vector<8x32xf32>
    %311 = vector.extract_strided_slice %306 {offsets = [0, 96], sizes = [8, 32], strides = [1, 1]} : vector<8x128xf32> to vector<8x32xf32>
    %312 = arith.mulf %309, %277 : vector<8x32xf32>
    %313 = arith.mulf %308, %310 : vector<8x32xf32>
    %314 = arith.addf %312, %313 : vector<8x32xf32>
    %315 = math.tanh %314 : vector<8x32xf32>
    %316 = arith.mulf %311, %315 : vector<8x32xf32>
    %c0_62 = arith.constant 0 : index
    %c0_63 = arith.constant 0 : index
    %c0_64 = arith.constant 0 : index
    %317 = vector.load %arg8[%c0_62, %c0_63, %c0_64] : memref<1x64x128xf32, #tpu.memory_space<vmem>>, vector<1x32x128xf32>
    %318 = vector.shape_cast %317 : vector<1x32x128xf32> to vector<32x128xf32>
    %cst_65 = arith.constant dense<0.000000e+00> : vector<8x128xf32>
    %319 = tpu.matmul %297, %318, %cst_65 {dimension_numbers = #tpu.dot_dimension_numbers<[1], [0], [0], [1], [0, 0, 1, 1], [], []>} : vector<8x32xf32>, vector<32x128xf32>, vector<8x128xf32> -> vector<8x128xf32>
    %c0_66 = arith.constant 0 : index
    %c32 = arith.constant 32 : index
    %c0_67 = arith.constant 0 : index
    %320 = vector.load %arg8[%c0_66, %c32, %c0_67] : memref<1x64x128xf32, #tpu.memory_space<vmem>>, vector<1x32x128xf32>
    %321 = vector.shape_cast %320 : vector<1x32x128xf32> to vector<32x128xf32>
    %cst_68 = arith.constant dense<0.000000e+00> : vector<8x128xf32>
    %322 = tpu.matmul %316, %321, %cst_68 {dimension_numbers = #tpu.dot_dimension_numbers<[1], [0], [0], [1], [0, 0, 1, 1], [], []>} : vector<8x32xf32>, vector<32x128xf32>, vector<8x128xf32> -> vector<8x128xf32>
    %323 = arith.addf %319, %322 : vector<8x128xf32>
    %c0_69 = arith.constant 0 : index
    %c0_70 = arith.constant 0 : index
    %c0_71 = arith.constant 0 : index
    %324 = vector.load %arg9[%c0_69, %c0_70, %c0_71] : memref<1x1x128xf32, #tpu.memory_space<vmem>>, vector<1x1x128xf32>
    %325 = vector.shape_cast %324 : vector<1x1x128xf32> to vector<1x128xf32>
    %326 = vector.broadcast %325 : vector<1x128xf32> to vector<8x128xf32>
    %327 = arith.addf %323, %326 : vector<8x128xf32>
    %c0_72 = arith.constant 0 : index
    %c0_73 = arith.constant 0 : index
    %c0_74 = arith.constant 0 : index
    %328 = vector.load %arg10[%c0_72, %c0_73, %c0_74] : memref<1x8x128xf32, #tpu.memory_space<vmem>>, vector<1x8x128xf32>
    %329 = vector.shape_cast %328 : vector<1x8x128xf32> to vector<8x128xf32>
    %330 = vector.shape_cast %327 : vector<8x128xf32> to vector<1x8x128xf32>
    tpu.vector_store %arg10[%c0_72, %c0_73, %c0_74], %330 {strides = array<i32>} : memref<1x8x128xf32, #tpu.memory_space<vmem>>, vector<1x8x128xf32>,
    return
  }
  func.func @transform_0(%arg0: i32) -> (i32, i32, i32, i32) {
    %c0_i32 = arith.constant 0 : i32
    %c0_i32_0 = arith.constant 0 : i32
    %c0_i32_1 = arith.constant 0 : i32
    %c0_i32_2 = arith.constant 0 : i32
    return %arg0, %c0_i32, %c0_i32_0, %c0_i32_1 : i32, i32, i32, i32
  }
  func.func @transform_1(%arg0: i32) -> (i32, i32, i32) {
    %c0_i32 = arith.constant 0 : i32
    %c0_i32_0 = arith.constant 0 : i32
    %c0_i32_1 = arith.constant 0 : i32
    return %arg0, %c0_i32, %c0_i32_0 : i32, i32, i32
  }
  func.func @transform_2(%arg0: i32) -> (i32, i32, i32) {
    %c0_i32 = arith.constant 0 : i32
    %c0_i32_0 = arith.constant 0 : i32
    %c0_i32_1 = arith.constant 0 : i32
    return %arg0, %c0_i32, %c0_i32_0 : i32, i32, i32
  }
  func.func @transform_3(%arg0: i32) -> (i32, i32, i32) {
    %c0_i32 = arith.constant 0 : i32
    %c0_i32_0 = arith.constant 0 : i32
    %c0_i32_1 = arith.constant 0 : i32
    return %arg0, %c0_i32, %c0_i32_0 : i32, i32, i32
  }
  func.func @transform_4(%arg0: i32) -> (i32, i32, i32) {
    %c0_i32 = arith.constant 0 : i32
    %c0_i32_0 = arith.constant 0 : i32
    %c0_i32_1 = arith.constant 0 : i32
    return %arg0, %c0_i32, %c0_i32_0 : i32, i32, i32
  }
  func.func @transform_5(%arg0: i32) -> (i32, i32, i32) {
    %c0_i32 = arith.constant 0 : i32
    %c0_i32_0 = arith.constant 0 : i32
    %c0_i32_1 = arith.constant 0 : i32
    return %arg0, %c0_i32, %c0_i32_0 : i32, i32, i32
  }
  func.func @transform_6(%arg0: i32) -> (i32, i32, i32) {
    %c0_i32 = arith.constant 0 : i32
    %c0_i32_0 = arith.constant 0 : i32
    %c0_i32_1 = arith.constant 0 : i32
    return %arg0, %c0_i32, %c0_i32_0 : i32, i32, i32
  }
  func.func @transform_7(%arg0: i32) -> (i32, i32, i32) {
    %c0_i32 = arith.constant 0 : i32
    %c0_i32_0 = arith.constant 0 : i32
    %c0_i32_1 = arith.constant 0 : i32
    return %arg0, %c0_i32, %c0_i32_0 : i32, i32, i32
  }
  func.func @transform_8(%arg0: i32) -> (i32, i32, i32) {
    %c0_i32 = arith.constant 0 : i32
    %c0_i32_0 = arith.constant 0 : i32
    %c0_i32_1 = arith.constant 0 : i32
    return %arg0, %c0_i32, %c0_i32_0 : i32, i32, i32
  }
  func.func @transform_9(%arg0: i32) -> (i32, i32, i32) {
    %c0_i32 = arith.constant 0 : i32
    %c0_i32_0 = arith.constant 0 : i32
    %c0_i32_1 = arith.constant 0 : i32
    return %arg0, %c0_i32, %c0_i32_0 : i32, i32, i32
  }
}

</mosaic_0001>

<bundles_post_ra>
// kernel: tpu_custom_call.1
= control target key start
LH: loop header
LB: loop body
LE: loop exit
PB: predicated region body
PF: predicated region fallthrough
CT: control target
= control target key end

     0   :  { %s5385_s0 = inlined_call_operand.hbm [shape: f32[3,8,8,128], index: 0, kind: input, shape index: {}]   ;;  %s5386_s1 = inlined_call_operand.hbm [shape: f32[3,128,128], index: 1, kind: input, shape index: {}]   ;;  %s5387_s2 = inlined_call_operand.hbm [shape: f32[3,32,128], index: 2, kind: input, shape index: {}]   ;;  %s5388_s3 = inlined_call_operand.vmem [shape: f32[3,1,128], index: 3, kind: input, shape index: {}]   ;;  %s5389_s4 = inlined_call_operand.hbm [shape: f32[3,32,128], index: 4, kind: input, shape index: {}]   ;;  %s5390_s5 = inlined_call_operand.hbm [shape: f32[3,32,128], index: 5, kind: input, shape index: {}]   ;;  %s5391_s6 = inlined_call_operand.vmem [shape: f32[3,1,128], index: 6, kind: input, shape index: {}]   ;;  %s5392_s7 = inlined_call_operand.hbm [shape: f32[3,64,128], index: 7, kind: input, shape index: {}]   ;;  %s5393_s8 = inlined_call_operand.vmem [shape: f32[3,1,128], index: 8, kind: input, shape index: {}]   ;;  %s5394_s9 = inlined_call_operand.hbm [shape: f32[3,8,128], index: 9, kind: output, shape index: {}]  }
   0x1   :  { %5412 = sst [smem:[#allocation25_spill]] %s5385_s0 }
   0x2   :  { %5413 = sst [smem:[#allocation26_spill]] %s5386_s1 }
   0x3   :  { %5414 = sst [smem:[#allocation27_spill]] %s5388_s3 }
   0x4   :  { %5415 = sst [smem:[#allocation28_spill]] %s5389_s4 }
   0x5   :  { %5416 = sst [smem:[#allocation29_spill]] %s5391_s6 }
   0x6   :  { %5417 = sst [smem:[#allocation30_spill]] %s5393_s8 }
   0x7   :  { %5418 = sst [smem:[#allocation31_spill]] %s5394_s9 }
   0x8   :  { %14 = vsyncpa [#allocation3], 0 }
   0x9   :  { %16 = vsyncpa [#allocation3 + $0x1], 0 }
   0xa   :  { %17 = vsyncpa [#allocation6], 0 }
   0xb   :  { %19 = vsyncpa [#allocation6 + $0x1], 0 }
   0xc   :  { %20 = vsyncpa [#allocation9], 0 }
   0xd   :  { %22 = vsyncpa [#allocation9 + $0x1], 0 }
   0xe   :  { %23 = vsyncpa [#allocation12], 0 }
   0xf   :  { %25 = vsyncpa [#allocation12 + $0x1], 0 }
  0x10   :  { %26 = vsyncpa [#allocation4], 0 }
  0x11   :  { %28 = vsyncpa [#allocation4 + $0x1], 0  ;;  %s4591_s30 = smov 0   ;;  %s4593_s10 = smov 0  }
  0x12   :  { %s4595_s11 = smov 0   ;;  %s4597_s12 = smov 0  }
  0x13 LB: > { %5419 = sst [smem:[#allocation19_spill]] %s4513_s30  ;;  %s4612_s13 = sadd.s32 4294967295, %s4525_s12   ;;  %s4525_s12 = sphi %s4597_s12, %s5451_s12   ;;  %s4521_s11 = sphi %s4595_s11, %s5453_s11   ;;  %s4517_s10 = sphi %s4593_s10, %s5455_s10   ;;  %s4513_s30 = sphi %s4591_s30, %s5454_s30  }
  0x14   : > { %5420 = sst [smem:[#allocation20_spill]] %s4521_s11  ;;  %s3283_s14 = sadd.s32 4294967294, %s4525_s12  }
  0x15   : > { %s4616_s15 = sadd.s32 1, %s4525_s12   ;;  %s41_s16 = sadd.s32 1, %s4521_s11 }
  0x16   : > { %5421 = sst [smem:[#allocation21_spill]] %s4616_s15  ;;  %s38_s17 = ssub.s32 %s4525_s12, %s4616_s15 }
  0x17   : > { %p48_p0 = scmp.ne.s32.totalorder %s4521_s11, %s4517_s10  ;;  %p39_p1 = scmp.eq.s32.totalorder %s38_s17, 0 }
  0x18   : > { %p49_p2 = scmp.eq.s32.totalorder %s4525_s12, 0  ;;  %p54_p3 = scmp.ne.s32.totalorder %s4517_s10, %s4513_s30 }
  0x19   : > { %p55_p4 = scmp.eq.s32.totalorder %s4612_s13, 0  ;;  %p286_p7 = scmp.eq.s32.totalorder %s4612_s13, 2 }
  0x1a   : > { %s4628_s18 = scalar_select %p39_p1, %s4521_s11, %s41_s16  }
  0x1b   : > { %p50_p5 = por %p49_p2, %p48_p0  ;;  %p4630_p6 = por %p55_p4, %p54_p3 }
  0x1c   : > { %5422 = sst [smem:[#allocation22_spill]] %s4628_s18  ;;  %p292_p8 = scmp.eq.s32.totalorder %s3283_s14, 2 }
  0x1d   : > { %s5423_s19 = scalar_select %p4630_p6, 1, 0 }
  0x1e   : > { %p4098_p9 = scmp.lt.s32.totalorder %s4525_s12, 3  ;;  %p4636_p10 = por %p286_p7, %p48_p0 }
  0x1f   : > { %p4640_p11 = por %p292_p8, %p54_p3  ;;  %s4645_s22 = sand.u32 1, %s4521_s11  }
  0x20   : > { %s5424_s20 = scalar_select %p4636_p10, 1, 0 }
  0x21   : > { %s5426_s21 = scalar_select %p4640_p11, 1, 0 }
  0x22   : > { %5425 = sst [smem:[#allocation23_spill]] %s5424_s20  ;;  %p4647_p12 = pnand %p4098_p9, %p50_p5 }
  0x23   : > { %5427 = sst [smem:[#allocation24_spill]] %s5426_s21  ;;  %s5396_s24 = sand.u32 1, %s4525_s12  }
  0x24   : > { %s3289_s25 = sshll.u32 %s4645_s22, 7  ;;  %s3360_s26 = sshll.u32 %s4525_s12, 11 }
  0x25   : > { %s5429_s1 = sld [smem:[#allocation26_spill]]  ;;  %s337_s14 = scalar_lea.vmem [#allocation5], %s3289_s25 }
  0x26   : > { %s344_s16 = sshll.u32 %s337_s14, 4  ;;  %s4664_s17 = scalar_lea.sflag [#allocation6], %s5396_s24  ;;  %s4659_s16 = int_to_ptr.vmem [resolvable:$true] %s344_s16 }
  0x27   : > { %p4670_p1 = pneg %p4647_p12 }
  0x2b   : > { %s4657_s29 = scalar_lea.hbm %s5429_s1, %s3360_s26  ;;  %s4272_s27 = scalar_lea.hbm %s5429_s1, 6144 }
  0x2c   : > { %s4267_s18 = scalar_lea.hbm %s4657_s29, 2048  ;;  %p4273_p4 = scmp.lt.u32.totalorder %s4657_s29, %s5429_s1 }
  0x2d   : > { %p4268_p0 = scmp.ne.s32.totalorder %s4657_s29, %s4267_s18  ;;  %p4274_p5 = scmp.lt.u32.totalorder %s4272_s27, %s4267_s18 }
  0x2e   : > { %p4276_p8 = scmp.lt.u32.totalorder %s4267_s18, %s4657_s29 }
  0x2f   : > { %p4270_p2 = pnand %p4670_p1, %p4268_p0  ;;  %p4275_p7 = por %p4274_p5, %p4273_p4 }
  0x31   : > { %p4271_p3 = pneg %p4270_p2  ;;  %p4277_p9 = por %p4276_p8, %p4275_p7 }
  0x33   : > { %p4278_p13 = pnand %p4277_p9, %p4271_p3 }
  0x35   : > { %4281 = shalt.err (!%p4278_p13)
}
  0x36   : > { %s4282_s24 = scalar_lea.vmem %s4659_s16, 2048  ;;  %s4527_s26 = smov [#allocation5]  }
  0x37   : > { %p4283_p0 = scmp.ne.s32.totalorder %s4659_s16, %s4282_s24  ;;  %s4287_s25 = sshll.u32 %s4527_s26, 4  ;;  %s4288_s25 = int_to_ptr.vmem [resolvable:$false] %s4287_s25 }
  0x38   : > { %s4289_s28 = scalar_lea.vmem %s4288_s25, 4096  ;;  %p4290_p10 = scmp.lt.s32.totalorder %s4659_s16, %s4288_s25 }
  0x39   : > { %p4285_p2 = pnand %p4283_p0, %p4670_p1  ;;  %p4291_p6 = scmp.lt.s32.totalorder %s4289_s28, %s4282_s24 }
  0x3b   : > { %p4286_p11 = pneg %p4285_p2  ;;  %p4292_p4 = por %p4291_p6, %p4290_p10 }
  0x3d   : > { %p4293_p5 = pnand %p4292_p4, %p4286_p11 }
  0x3f   : > { %4296 = shalt.err (!%p4293_p5)
}
  0x40   : > { %s5399_s18 = smov 128   ;;  %s5401_s27 = smov 8  }
  0x41   : > { %4081 = dma.hbm_to_vmem [thread:$0]  (!%p4647_p12), %s4657_s29, 2048, %s4659_s16, %s4664_s17, %s5399_s18, %s5399_s18, %s5401_s27  }
  0x42   : > { %p454_p6 = scmp.lt.s32.totalorder %s4525_s12, 4  ;;  %s4699_s24 = sshll.u32 %s4645_s22, 5 }
  0x43   : > { %s4702_s14 = sshll.u32 %s4525_s12, 9  ;;  %p5431_p10 = scmp.ge.s32.totalorder %s4525_s12, 1 }
  0x44   : > { %s5433_s4 = sld [smem:[#allocation28_spill]]  ;;  %s385_s29 = scalar_lea.vmem [#allocation8], %s4699_s24 }
  0x45   : > { %p4706_p11 = pnand %p5431_p10, %p454_p6  ;;  %s392_s16 = sshll.u32 %s385_s29, 4  ;;  %s4717_s16 = int_to_ptr.vmem [resolvable:$true] %s392_s16 }
  0x46   : > { %s5434_s18 = sand.u32 1, %s4525_s12  }
  0x47   : > { %s5432_s26 = scalar_select %p4706_p11, 1, 0 }
  0x48   : > { %s4721_s27 = scalar_lea.sflag [#allocation9], %s5434_s18 }
  0x4a   : > { %s4714_s1 = scalar_lea.hbm %s5433_s4, %s4702_s14  ;;  %s4302_s28 = scalar_lea.hbm %s5433_s4, 1536 }
  0x4b   : > { %s4297_s15 = scalar_lea.hbm %s4714_s1, 512  ;;  %p4303_p8 = scmp.lt.u32.totalorder %s4714_s1, %s5433_s4 }
  0x4c   : > { %p4298_p13 = scmp.ne.s32.totalorder %s4714_s1, %s4297_s15  ;;  %p4304_p9 = scmp.lt.u32.totalorder %s4302_s28, %s4297_s15 }
  0x4d   : > { %p4306_p2 = scmp.lt.u32.totalorder %s4297_s15, %s4714_s1 }
  0x4e   : > { %p4300_p3 = pnand %p4298_p13, %p4670_p1  ;;  %p4305_p0 = por %p4304_p9, %p4303_p8 }
  0x50   : > { %p4301_p7 = pneg %p4300_p3  ;;  %p4307_p4 = por %p4306_p2, %p4305_p0 }
  0x52   : > { %p4308_p5 = pnand %p4307_p4, %p4301_p7 }
  0x54   : > { %4311 = shalt.err (!%p4308_p5)
}
  0x55   : > { %s4312_s18 = scalar_lea.vmem %s4717_s16, 512  ;;  %s4530_s21 = smov [#allocation8]  }
  0x56   : > { %p4313_p6 = scmp.ne.s32.totalorder %s4717_s16, %s4312_s18  ;;  %s4317_s29 = sshll.u32 %s4530_s21, 4  ;;  %s4318_s29 = int_to_ptr.vmem [resolvable:$false] %s4317_s29 }
  0x57   : > { %s4319_s9 = scalar_lea.vmem %s4318_s29, 1024  ;;  %p4320_p3 = scmp.lt.s32.totalorder %s4717_s16, %s4318_s29 }
  0x58   : > { %p4315_p10 = pnand %p4313_p6, %p4670_p1  ;;  %p4321_p11 = scmp.lt.s32.totalorder %s4319_s9, %s4312_s18 }
  0x5a   : > { %p4316_p13 = pneg %p4315_p10  ;;  %p4322_p8 = por %p4321_p11, %p4320_p3 }
  0x5c   : > { %p4323_p9 = pnand %p4322_p8, %p4316_p13 }
  0x5e   : > { %4326 = shalt.err (!%p4323_p9)
}
  0x5f   : > { %s5435_s30 = smov 8   ;;  %s5436_s15 = smov 128  }
  0x60   : > { %4087 = dma.hbm_to_vmem [thread:$0]  (!%p4647_p12), %s4714_s1, 512, %s4717_s16, %s4721_s27, %s5436_s15, %s5436_s15, %s5435_s30  }
  0x61   : > { %s5411_s25 = sshll.u32 %s4645_s22, 6  ;;  %s5410_s28 = sshll.u32 %s4525_s12, 10 }
  0x62   : > { %s5437_s0 = sld [smem:[#allocation25_spill]]  ;;  %s316_s9 = scalar_lea.vmem [#allocation2], %s5411_s25 }
  0x63   : > { %s323_s4 = sshll.u32 %s316_s9, 4  ;;  %s4765_s1 = scalar_lea.hbm %s5387_s2, %s4702_s14  ;;  %s4759_s4 = int_to_ptr.vmem [resolvable:$true] %s323_s4 }
  0x64   : > { %s313_s16 = scalar_lea.sflag [#allocation3], %s4645_s22 }
  0x68   : > { %s4755_s29 = scalar_lea.hbm %s5437_s0, %s5410_s28  ;;  %s4332_s28 = scalar_lea.hbm %s5437_s0, 3072 }
  0x69   : > { %s4327_s6 = scalar_lea.hbm %s4755_s29, 1024  ;;  %p4333_p2 = scmp.lt.u32.totalorder %s4755_s29, %s5437_s0 }
  0x6a   : > { %p4328_p11 = scmp.ne.s32.totalorder %s4755_s29, %s4327_s6  ;;  %p4334_p4 = scmp.lt.u32.totalorder %s4332_s28, %s4327_s6 }
  0x6b   : > { %p4336_p6 = scmp.lt.u32.totalorder %s4327_s6, %s4755_s29 }
  0x6c   : > { %p4330_p7 = pnand %p4328_p11, %p4670_p1  ;;  %p4335_p5 = por %p4334_p4, %p4333_p2 }
  0x6e   : > { %p4331_p0 = pneg %p4330_p7  ;;  %p4337_p10 = por %p4336_p6, %p4335_p5 }
  0x70   : > { %p4338_p13 = pnand %p4337_p10, %p4331_p0 }
  0x72   : > { %4341 = shalt.err (!%p4338_p13)
}
  0x73   : > { %s4342_s8 = scalar_lea.vmem %s4759_s4, 1024  ;;  %s4531_s20 = smov [#allocation2]  }
  0x74   : > { %p4343_p3 = scmp.ne.s32.totalorder %s4759_s4, %s4342_s8  ;;  %s4347_s9 = sshll.u32 %s4531_s20, 4  ;;  %s4348_s9 = int_to_ptr.vmem [resolvable:$false] %s4347_s9 }
  0x75   : > { %s4349_s3 = scalar_lea.vmem %s4348_s9, 2048  ;;  %p4350_p11 = scmp.lt.s32.totalorder %s4759_s4, %s4348_s9 }
  0x76   : > { %p4345_p8 = pnand %p4343_p3, %p4670_p1  ;;  %p4351_p7 = scmp.lt.s32.totalorder %s4349_s3, %s4342_s8 }
  0x78   : > { %p4346_p9 = pneg %p4345_p8  ;;  %p4352_p2 = por %p4351_p7, %p4350_p11 }
  0x7a   : > { %p4353_p4 = pnand %p4352_p2, %p4346_p9 }
  0x7c   : > { %4356 = shalt.err (!%p4353_p4)
}
  0x7d   : > { %4078 = dma.hbm_to_vmem [thread:$0]  (!%p4647_p12), %s4755_s29, 1024, %s4759_s4, %s313_s16, %s5436_s15, %s5436_s15, %s5435_s30  }
  0x7e   : > { %s358_s6 = scalar_lea.vmem [#allocation7], %s4699_s24  ;;  %s4801_s21 = scalar_lea.hbm %s5390_s5, %s4702_s14 }
  0x7f   : > { %s365_s25 = sshll.u32 %s358_s6, 4  ;;  %s4357_s8 = scalar_lea.hbm %s4765_s1, 512  ;;  %s4795_s25 = int_to_ptr.vmem [resolvable:$true] %s365_s25 }
  0x80   : > { %p4358_p0 = scmp.ne.s32.totalorder %s4765_s1, %s4357_s8  ;;  %s4362_s3 = scalar_lea.hbm %s5387_s2, 1536 }
  0x81   : > { %p4363_p10 = scmp.lt.u32.totalorder %s4765_s1, %s5387_s2  ;;  %p4364_p13 = scmp.lt.u32.totalorder %s4362_s3, %s4357_s8 }
  0x82   : > { %p4360_p5 = pnand %p4358_p0, %p4670_p1  ;;  %p4366_p8 = scmp.lt.u32.totalorder %s4357_s8, %s4765_s1 }
  0x83   : > { %p4365_p3 = por %p4364_p13, %p4363_p10 }
  0x84   : > { %p4361_p6 = pneg %p4360_p5 }
  0x85   : > { %p4367_p9 = por %p4366_p8, %p4365_p3 }
  0x87   : > { %p4368_p11 = pnand %p4367_p9, %p4361_p6 }
  0x89   : > { %4371 = shalt.err (!%p4368_p11)
}
  0x8a   : > { %s4372_s14 = scalar_lea.vmem %s4795_s25, 512  ;;  %s4532_s29 = smov [#allocation7]  }
  0x8b   : > { %p4373_p7 = scmp.ne.s32.totalorder %s4795_s25, %s4372_s14  ;;  %s4377_s16 = sshll.u32 %s4532_s29, 4  ;;  %s4378_s16 = int_to_ptr.vmem [resolvable:$false] %s4377_s16 }
  0x8c   : > { %s4379_s0 = scalar_lea.vmem %s4378_s16, 1024  ;;  %p4380_p0 = scmp.lt.s32.totalorder %s4795_s25, %s4378_s16 }
  0x8d   : > { %p4375_p2 = pnand %p4373_p7, %p4670_p1  ;;  %p4381_p5 = scmp.lt.s32.totalorder %s4379_s0, %s4372_s14 }
  0x8f   : > { %p4376_p4 = pneg %p4375_p2  ;;  %p4382_p10 = por %p4381_p5, %p4380_p0 }
  0x91   : > { %p4383_p13 = pnand %p4382_p10, %p4376_p4 }
  0x93   : > { %4386 = shalt.err (!%p4383_p13)
}
  0x94   : > { %4084 = dma.hbm_to_vmem [thread:$0]  (!%p4647_p12), %s4765_s1, 512, %s4795_s25, %s4664_s17, %s5436_s15, %s5436_s15, %s5435_s30  }
  0x95   : > { %s406_s6 = scalar_lea.vmem [#allocation10], %s4699_s24  ;;  %s4387_s18 = scalar_lea.hbm %s4801_s21, 512 }
  0x96   : > { %s413_s28 = sshll.u32 %s406_s6, 4  ;;  %p4388_p6 = scmp.ne.s32.totalorder %s4801_s21, %s4387_s18  ;;  %s4829_s28 = int_to_ptr.vmem [resolvable:$true] %s413_s28 }
  0x97   : > { %s4392_s9 = scalar_lea.hbm %s5390_s5, 1536  ;;  %p4393_p9 = scmp.lt.u32.totalorder %s4801_s21, %s5390_s5 }
  0x98   : > { %p4390_p3 = pnand %p4388_p6, %p4670_p1  ;;  %p4394_p11 = scmp.lt.u32.totalorder %s4392_s9, %s4387_s18 }
  0x99   : > { %p4396_p2 = scmp.lt.u32.totalorder %s4387_s18, %s4801_s21 }
  0x9a   : > { %p4391_p8 = pneg %p4390_p3  ;;  %p4395_p7 = por %p4394_p11, %p4393_p9 }
  0x9c   : > { %p4397_p4 = por %p4396_p2, %p4395_p7 }
  0x9e   : > { %p4398_p0 = pnand %p4397_p4, %p4391_p8 }
  0xa0   : > { %4401 = shalt.err (!%p4398_p0)
}
  0xa1   : > { %s4402_s17 = scalar_lea.vmem %s4829_s28, 512  ;;  %s4533_s24 = smov [#allocation10]  }
  0xa2   : > { %p4403_p5 = scmp.ne.s32.totalorder %s4829_s28, %s4402_s17  ;;  %s4407_s1 = sshll.u32 %s4533_s24, 4  ;;  %s4408_s1 = int_to_ptr.vmem [resolvable:$false] %s4407_s1 }
  0xa3   : > { %s4409_s25 = scalar_lea.vmem %s4408_s1, 1024  ;;  %p4410_p6 = scmp.lt.s32.totalorder %s4829_s28, %s4408_s1 }
  0xa4   : > { %p4405_p10 = pnand %p4403_p5, %p4670_p1  ;;  %p4411_p3 = scmp.lt.s32.totalorder %s4409_s25, %s4402_s17 }
  0xa6   : > { %p4406_p13 = pneg %p4405_p10  ;;  %p4412_p9 = por %p4411_p3, %p4410_p6 }
  0xa8   : > { %p4413_p11 = pnand %p4412_p9, %p4406_p13 }
  0xaa   : > { %4416 = shalt.err (!%p4413_p11)
}
  0xab   : > { %4090 = dma.hbm_to_vmem [thread:$0]  (!%p4647_p12), %s4801_s21, 512, %s4829_s28, %s4721_s27, %s5436_s15, %s5436_s15, %s5435_s30  }
  0xac   : > { %s5438_s14 = sshll.u32 %s4525_s12, 10  ;;  %s5439_s6 = sshll.u32 %s4645_s22, 6 }
  0xad   : > { %s4861_s0 = scalar_lea.hbm %s5392_s7, %s5438_s14  ;;  %s433_s18 = scalar_lea.vmem [#allocation11], %s5439_s6 }
  0xae   : > { %s440_s8 = sshll.u32 %s433_s18, 4  ;;  %s430_s20 = scalar_lea.sflag [#allocation12], %s4645_s22  ;;  %s4865_s8 = int_to_ptr.vmem [resolvable:$true] %s440_s8 }
  0xaf   : > { %s4417_s9 = scalar_lea.hbm %s4861_s0, 1024  ;;  %s4422_s28 = scalar_lea.hbm %s5392_s7, 3072 }
  0xb0   : > { %p4418_p8 = scmp.ne.s32.totalorder %s4861_s0, %s4417_s9  ;;  %p4423_p4 = scmp.lt.u32.totalorder %s4861_s0, %s5392_s7 }
  0xb1   : > { %p4424_p0 = scmp.lt.u32.totalorder %s4422_s28, %s4417_s9  ;;  %p4426_p10 = scmp.lt.u32.totalorder %s4417_s9, %s4861_s0 }
  0xb2   : > { %p4420_p7 = pnand %p4418_p8, %p4670_p1 }
  0xb3   : > { %p4425_p5 = por %p4424_p0, %p4423_p4 }
  0xb4   : > { %p4421_p2 = pneg %p4420_p7 }
  0xb5   : > { %p4427_p13 = por %p4426_p10, %p4425_p5 }
  0xb7   : > { %p4428_p6 = pnand %p4427_p13, %p4421_p2 }
  0xb9   : > { %4431 = shalt.err (!%p4428_p6)
}
  0xba   : > { %s4432_s17 = scalar_lea.vmem %s4865_s8, 1024  ;;  %s4534_s24 = smov [#allocation11]  }
  0xbb   : > { %p4433_p3 = scmp.ne.s32.totalorder %s4865_s8, %s4432_s17  ;;  %s4437_s1 = sshll.u32 %s4534_s24, 4  ;;  %s4438_s1 = int_to_ptr.vmem [resolvable:$false] %s4437_s1 }
  0xbc   : > { %s4439_s25 = scalar_lea.vmem %s4438_s1, 2048  ;;  %p4440_p8 = scmp.lt.s32.totalorder %s4865_s8, %s4438_s1 }
  0xbd   : > { %p4435_p9 = pnand %p4433_p3, %p4670_p1  ;;  %p4441_p7 = scmp.lt.s32.totalorder %s4439_s25, %s4432_s17 }
  0xbf   : > { %p4436_p11 = pneg %p4435_p9  ;;  %p4442_p4 = por %p4441_p7, %p4440_p8 }
  0xc1   : > { %p4443_p0 = pnand %p4442_p4, %p4436_p11 }
  0xc3   : > { %4446 = shalt.err (!%p4443_p0)
}
  0xc4   : > { %4093 = dma.hbm_to_vmem [thread:$0]  (!%p4647_p12), %s4861_s0, 1024, %s4865_s8, %s430_s20, %s5436_s15, %s5436_s15, %s5435_s30  }
  0xc5   : > { %p5440_p1 = scmp.ne.s32.totalorder %s5432_s26, 0 }
  0xc6   : > { %s4897_s11 = sand.u32 (!%p5440_p1), 1, %s4517_s10   ;;  %p5441_p2 = scmp.ne.s32.totalorder (!%p5440_p1), %s5423_s19, 0 }
  0xc7   : > { %458 = sbr.rel (%p5440_p1) target bundleno = 6834 (0x1ab2), region = 56  ;;  %s3305_s14 = sshll.u32 (!%p5440_p1), %s4897_s11, 6 }
  0xc8   : > { %s461_s29 = scalar_lea.sflag (!%p5440_p1), [#allocation3], %s4897_s11  ;;  %s4901_s23 = scalar_lea.vmem (!%p5440_p1), [#allocation2], %s3305_s14 }
  0xce   : > { %4492 = dma.done.wait (%p5441_p2), %s461_s29, 1024  }
  0xcf   : > { %4494 = vsyncadd (%p5441_p2), %s461_s29, 4294966272  ;;  %s469_s22 = sand.u32 1, %s4612_s13   ;;  %s3306_s26 = sshll.u32 %s4897_s11, 7 }
  0xd0   : > { %s470_s30 = scalar_lea.sflag [#allocation6], %s469_s22  ;;  %s4909_s15 = scalar_lea.vmem [#allocation5], %s3306_s26 }
  0xd1   : > { %4496 = dma.done.wait (%p5441_p2), %s470_s30, 2560  }
  0xd2   : > { %4498 = vsyncadd (%p5441_p2), %s470_s30, 4294964736  ;;  %s3307_s16 = sshll.u32 %s4897_s11, 5  ;;  %s488_s6 = scalar_lea.sflag [#allocation9], %s469_s22 }
  0xd3   : > { %s4916_s0 = scalar_lea.vmem [#allocation7], %s3307_s16  ;;  %s4918_s18 = scalar_lea.vmem [#allocation8], %s3307_s16 }
  0xd4   : > { %4500 = dma.done.wait (%p5441_p2), %s488_s6, 1024  }
  0xd5   : > { %4502 = vsyncadd (%p5441_p2), %s488_s6, 4294966272  ;;  %s4924_s8 = scalar_lea.vmem [#allocation10], %s3307_s16  ;;  %s506_s20 = scalar_lea.sflag [#allocation12], %s4897_s11 }
  0xd6   : > { %s4927_s9 = scalar_lea.vmem [#allocation11], %s3305_s14 }
  0xd7   : > { %4504 = dma.done.wait (%p5441_p2), %s506_s20, 1024  }
  0xd8   : > { %4506 = vsyncadd (%p5441_p2), %s506_s20, 4294966272  ;;  %v4535_v0 = vmov 0.0|0.0   ;;  %vm4536_vm0 = vmmov 0   ;;  %v4537_v1 = vmov 0.0   ;;  %v595_v2 = vld [vmem:[%s4909_s15] sm:$0xff]  ;;  %v596_v3 = vld [vmem:[%s4909_s15 + $0x8] sm:$0xff] }
  0xd9   : > { %3881 = vmatprep.subr.bf16.mxu1 %v4535_v0  ;;  %3571 = vmatprep.mubr.msk.f32.mxu1 %vm4536_vm0, %v4537_v1  ;;  %v597_v4 = vld [vmem:[%s4909_s15 + $0x10] sm:$0xff]  ;;  %v3849_v5 = vpack.c.bf16 %v596_v3, %v595_v2  ;;  %v598_v6 = vld [vmem:[%s4909_s15 + $0x18] sm:$0xff]  ;;  %v599_v8 = vld [vmem:[%s4909_s15 + $0x20] sm:$0xff]  ;;  %p578_p12 = scmp.lt.s32.totalorder %s4612_s13, 2  ;;  %s5442_s28 = sld [smem:[#allocation27_spill]]  ;;  %vm742_vm1 = vcmask 261120  }
  0xda   : > { %v3853_v7 = vpack.c.bf16 %v598_v6, %v597_v4  ;;  %v600_v9 = vld [vmem:[%s4909_s15 + $0x28] sm:$0xff]  ;;  %v723_v10 = vld [vmem:[%s4916_s0] sm:$0xff]  ;;  %v601_v12 = vld [vmem:[%s4909_s15 + $0x30] sm:$0xff]  ;;  %s4538_s4 = smov 64   ;;  %s4539_s17 = smov 32  }
  0xdb   : > { %3850 = vmatprep.subr.bf16.mxu0 %v3849_v5  ;;  %v3857_v11 = vpack.c.bf16 %v600_v9, %v599_v8  ;;  %v602_v13 = vld [vmem:[%s4909_s15 + $0x38] sm:$0xff]  ;;  %v724_v14 = vld [vmem:[%s4916_s0 + $0x8] sm:$0xff]  ;;  %v587_v16 = vld [vmem:[%s4901_s23] sm:$0xff]  ;;  %s4976_s19 = scalar_select %p578_p12, %s4612_s13, 2 }
  0xdc   : > { %3852 = vmatpush3.bf16.msra.mxu0 %v3849_v5  ;;  %v4946_v15 = vpack.c.bf16 %v724_v14, %v723_v10  ;;  %v725_v17 = vld [vmem:[%s4916_s0 + $0x10] sm:$0xff]  ;;  %v726_v18 = vld [vmem:[%s4916_s0 + $0x18] sm:$0xff]  ;;  %3551 = vmatprep.mubr.f32.mxu0 %v587_v16  ;;  %v3861_v20 = vpack.c.bf16 %v602_v13, %v601_v12  ;;  %v603_v21 = vld [vmem:[%s4909_s15 + $0x40] sm:$0xff]  ;;  %s5443_s25 = sld [smem:[#allocation29_spill]]  ;;  %s3311_s29 = sshll.u32 %s4897_s11, 3 }
  0xdd   : > { %3854 = vmatprep.subr.bf16.mxu0 %v3853_v7  ;;  %v4952_v19 = vpack.c.bf16 %v726_v18, %v725_v17  ;;  %v604_v22 = vld [vmem:[%s4909_s15 + $0x48] sm:$0xff]  ;;  %v605_v24 = vld [vmem:[%s4909_s15 + $0x50] sm:$0xff]  ;;  %v606_v25 = vld [vmem:[%s4909_s15 + $0x58] sm:$0xff]  ;;  %s5444_s26 = sld [smem:[#allocation30_spill]]  ;;  %s5445_s30 = sld [smem:[#allocation23_spill]] }
  0xde   : > { %3883 = vmatpush3.bf16.msra.mxu1 %v4946_v15  ;;  %v3865_v23 = vpack.c.bf16 %v604_v22, %v603_v21  ;;  %v3869_v26 = vpack.c.bf16 %v606_v25, %v605_v24  ;;  %v607_v27 = vld [vmem:[%s4909_s15 + $0x60] sm:$0xff]  ;;  %v608_v28 = vld [vmem:[%s4909_s15 + $0x68] sm:$0xff]  ;;  %v609_v30 = vld [vmem:[%s4909_s15 + $0x70] sm:$0xff]  ;;  %s3356_s16 = sshll.u32 %s4612_s13, 7  ;;  %s577_s0 = scalar_lea.vmem [#allocation13], %s3311_s29 }
  0xdf   : > { %3884 = vmatprep.subr.bf16.mxu1 %v4535_v0  ;;  %v3873_v29 = vpack.c.bf16 %v608_v28, %v607_v27  ;;  %v610_v31 = vld [vmem:[%s4909_s15 + $0x78] sm:$0xff]  ;;  %v588_v33 = vld [vmem:[%s4901_s23 + $0x8] sm:$0xff]  ;;  %s580_s3 = scalar_lea.vmem %s5442_s28, %s4976_s19  ;;  %v727_v51 = vld [vmem:[%s4918_s18] sm:$0xff]  ;;  %s3077_s6 = sshll.u32 %s577_s0, 4  ;;  %s5344_s6 = int_to_ptr.vmem [resolvable:$true] %s3077_s6 }
  0xe0   : > { %3856 = vmatpush3.bf16.msra.mxu0 %v3853_v7  ;;  %v3877_v32 = vpack.c.bf16 %v610_v31, %v609_v30  ;;  %v4982_v36 = vld [vmem:[%s580_s3] ss:$0 sm:$0xff]  ;;  %v728_v52 = vld [vmem:[%s4918_s18 + $0x8] sm:$0xff]  ;;  %v729_v53 = vld [vmem:[%s4918_s18 + $0x10] sm:$0xff]  ;;  %s5446_s20 = sld [smem:[#allocation31_spill]]  ;;  %s4447_s27 = scalar_lea.vmem %s5344_s6, 128 }
  0xe1   : > { %3858 = vmatprep.subr.bf16.mxu0 %v3857_v11  ;;  %v4995_v54 = vpack.c.bf16 %v728_v52, %v727_v51  ;;  %v730_v55 = vld [vmem:[%s4918_s18 + $0x18] sm:$0xff]  ;;  %v731_v60 = vld [vmem:[%s4924_s8] sm:$0xff]  ;;  %v732_v61 = vld [vmem:[%s4924_s8 + $0x8] sm:$0xff]  ;;  %p4448_p5 = scmp.ne.s32.totalorder %s5344_s6, %s4447_s27  ;;  %s4540_s13 = smov [#allocation13]  }
  0xe2   : > { %3886 = vmatpush3.bf16.msra.mxu1 %v4952_v19  ;;  %v4999_v56 = vpack.c.bf16 %v730_v55, %v729_v53  ;;  %v5008_v62 = vpack.c.bf16 %v732_v61, %v731_v60  ;;  %v733_v63 = vld [vmem:[%s4924_s8 + $0x10] sm:$0xff]  ;;  %v734_v2 = vld [vmem:[%s4924_s8 + $0x18] sm:$0xff]  ;;  %s583_s14 = scalar_lea.vmem %s5443_s25, %s4976_s19  ;;  %s4451_s21 = sshll.u32 %s4540_s13, 4  ;;  %s4452_s21 = int_to_ptr.vmem [resolvable:$false] %s4451_s21 }
  0xe3   : > { %3887 = vmatprep.subr.bf16.mxu1 %v4535_v0  ;;  %v5014_v4 = vpack.c.bf16 %v734_v2, %v733_v63  ;;  %v5039_v5 = vld [vmem:[%s583_s14] ss:$0 sm:$0xff]  ;;  %s586_s15 = scalar_lea.vmem %s5444_s26, %s4976_s19  ;;  %s3064_s19 = scalar_lea.sflag [#allocation4], %s4897_s11 }
  0xe4   : > { %3860 = vmatpush3.bf16.msra.mxu0 %v3857_v11  ;;  %p5447_p10 = scmp.ne.s32.totalorder %s5445_s30, 0  ;;  %s4453_s28 = scalar_lea.vmem %s4452_s21, 256 }
  0xe5   : > { %3862 = vmatprep.subr.bf16.mxu0 %v3861_v20  ;;  %3572 = vmatmul.mubr.f32.vlgmr.msra.gmra.mrb[0].mxu1 %v4537_v1  ;;  %p4454_p3 = scmp.lt.s32.totalorder %s5344_s6, %s4452_s21  ;;  %p4455_p9 = scmp.lt.s32.totalorder %s4453_s28, %s4447_s27 }
  0xe6   : > { %3582 = vmatprep.mubr.msk.f32.mxu1 %vm4536_vm0, %v4537_v1  ;;  %3889 = vmatpush3.bf16.msra.mxu1 %v4995_v54  ;;  %p4449_p13 = pnand %p4448_p5, %p5447_p10 }
  0xe7   : > { %3890 = vmatprep.subr.bf16.mxu1 %v4535_v0  ;;  %p4456_p11 = por %p4455_p9, %p4454_p3 }
  0xe8   : > { %3864 = vmatpush3.bf16.msra.mxu0 %v3861_v20  ;;  %p4450_p6 = pneg %p4449_p13 }
  0xe9   : > { %3866 = vmatprep.subr.bf16.mxu0 %v3865_v23 }
  0xea   : > { %3892 = vmatpush3.bf16.msra.mxu1 %v4999_v56  ;;  %p4457_p8 = pnand %p4456_p11, %p4450_p6 }
  0xeb   : > { %3893 = vmatprep.subr.bf16.mxu1 %v4535_v0 }
  0xec   : > { %3868 = vmatpush3.bf16.msra.mxu0 %v3865_v23 }
  0xed   : > { %3870 = vmatprep.subr.bf16.mxu0 %v3869_v26 }
  0xf0   : > { %3872 = vmatpush3.bf16.msra.mxu0 %v3869_v26 }
  0xf1   : > { %3874 = vmatprep.subr.bf16.mxu0 %v3873_v29 }
  0xf4   : > { %3876 = vmatpush3.bf16.msra.mxu0 %v3873_v29 }
  0xf5   : > { %3878 = vmatprep.subr.bf16.mxu0 %v3877_v32 }
  0xf8   : > { %3880 = vmatpush3.bf16.msra.mxu0 %v3877_v32 }
  0xf9   : > { %3917 = vmatprep.subr.bf16.mxu0 %v4535_v0 }
  0xfb   : > { %3552 = vmatmul.mubr.f32.vlgmr.msra.gmra.mrb[0].mxu0 %v588_v33 }
  0xfc   : > { %3919 = vmatpush3.bf16.msra.mxu0 %v4946_v15 }
  0xfd   : > { %3920 = vmatprep.subr.bf16.mxu0 %v4535_v0 }
 0x100   : > { %3922 = vmatpush3.bf16.msra.mxu0 %v4952_v19 }
 0x101   : > { %3923 = vmatprep.subr.bf16.mxu0 %v4535_v0 }
 0x1b8   : > { %v812_v34 = vpop.f32.mrb[0].mxu1 }
 0x1b9   : > { %v3573_v35 = vpop.f32.mrb[1].mxu1 }
 0x1ba   : > { %v589_v35 = vld [vmem:[%s4901_s23 + $0x10] sm:$0xff] }
 0x1bb   : > { %3554 = vmatprep.mubr.f32.mxu0 %v589_v35 }
 0x1ce   : > { %v4984_v37 = vpop.f32.mrb[0].mxu0 }
 0x1cf   : > { %v684_v38 = vpop.f32.mrb[1].mxu0  ;;  %v690_v9 = vadd.f32 %v4984_v37, %v4982_v36  ;;  %v590_v37 = vld [vmem:[%s4901_s23 + $0x18] sm:$0xff] }
 0x1d0   : > { %v685_v39 = vadd.f32 %v4982_v36, %v684_v38  ;;  %v591_v38 = vld [vmem:[%s4901_s23 + $0x20] sm:$0xff]  ;;  %3555 = vmatmul.mubr.f32.gmra.mrb[2].mxu0 %v590_v37 }
 0x1d1   : > { %3557 = vmatprep.mubr.f32.mxu0 %v591_v38 }
 0x1d2   : > { %v816_v40 = vadd.f32 %v812_v34, %v685_v39 }
 0x1d4   : > { %4139 = vtanh.f32 %v816_v40  ;;  %v3314_v42 = vmul.f32 -1.442695, %v816_v40  ;;  %v592_v40 = vld [vmem:[%s4901_s23 + $0x28] sm:$0xff] }
 0x1d5   : > { %3558 = vmatmul.mubr.f32.gmra.mrb[4].mxu0 %v592_v40 }
 0x1d6   : > { %4141 = vpow2.f32 %v3314_v42  ;;  %v593_v42 = vld [vmem:[%s4901_s23 + $0x30] sm:$0xff] }
 0x1d7   : > { %3560 = vmatprep.mubr.f32.mxu0 %v593_v42 }
 0x1de   : > { %v4140_v41 = vpop.eup %4139 }
 0x1df   : > { %826 = vrot.lane.b32.xlu0 %v4140_v41, %s4538_s4 }
 0x1e0   : > { %v4142_v43 = vpop.eup %4141 }
 0x1e1   : > { %v820_v44 = vadd.f32 1.0, %v4142_v43  ;;  %v594_v43 = vld [vmem:[%s4901_s23 + $0x38] sm:$0xff] }
 0x1e2   : > { %3561 = vmatmul.mubr.f32.gmra.mrb[6].mxu0 %v594_v43 }
 0x1e3   : > { %4143 = vrcp.f32 %v820_v44  ;;  %3637 = vmatprep.mubr.msk.f32.mxu0 %vm4536_vm0, %v4537_v1 }
 0x1ed   : > { %v4144_v45 = vpop.eup %4143 }
 0x1ee   : > { %v824_v48 = vmul.f32 0.0, %v4144_v45 }
 0x251   : > { %v827_v46 = vpop.permute.xlu0 %826 }
 0x252   : > { %v829_v47 = vmul.f32 %v4144_v45, %v827_v46 }
 0x254   : > { %831 = vrot.lane.b32.xlu0 %v829_v47, %s4539_s17 }
 0x2c6   : > { %v832_v49 = vpop.permute.xlu0 %831 }
 0x2c7   : > { %v4989_v50 = vadd.f32 %v832_v49, %v824_v48  ;;  %v5067_v48 = vpop.f32.mrb[2].mxu0 }
 0x2c8   : > { %v694_v49 = vpop.f32.mrb[3].mxu0  ;;  %v700_v37 = vadd.f32 %v5067_v48, %v4982_v36 }
 0x2c9   : > { %4145 = vtanh.f32 %v4989_v50 }
 0x2d3   : > { %v4146_v57 = vpop.eup %4145 }
 0x2d4   : > { %837 = vrot.lane.b32.xlu1 %v4146_v57, %s4538_s4 }
 0x346   : > { %v838_v58 = vpop.permute.xlu1 %837 }
 0x347   : > { %v840_v59 = vmul.f32 %v4144_v45, %v838_v58  ;;  %v695_v58 = vadd.f32 %v4982_v36, %v694_v49 }
 0x349   : > { %842 = vrot.lane.b32.xlu1 %v840_v59, %s4539_s17 }
 0x3bb   : > { %v843_v3 = vpop.permute.xlu1 %842 }
 0x3bc   : > { %3583 = vmatmul.mubr.msk.f32.vlgmr.msra.gmra.mrb[2].mxu1 %vm742_vm1, %v843_v3 }
 0x3bd   : > { %3895 = vmatpush3.bf16.msra.mxu1 %v5008_v62  ;;  %3593 = vmatprep.mubr.msk.f32.mxu1 %vm4536_vm0, %v4537_v1 }
 0x3be   : > { %3896 = vmatprep.subr.bf16.mxu1 %v4535_v0 }
 0x3c1   : > { %3898 = vmatpush3.bf16.msra.mxu1 %v5014_v4 }
 0x3c2   : > { %3899 = vmatprep.subr.bf16.mxu1 %v4535_v0 }
 0x3c4   : > { %3594 = vmatmul.mubr.f32.vlgmr.msra.gmra.mrb[2].mxu1 %v4537_v1 }
 0x3c5   : > { %3901 = vmatpush3.bf16.msra.mxu1 %v4946_v15  ;;  %3604 = vmatprep.mubr.msk.f32.mxu1 %vm4536_vm0, %v4537_v1 }
 0x3c6   : > { %3902 = vmatprep.subr.bf16.mxu1 %v4535_v0 }
 0x3c9   : > { %3904 = vmatpush3.bf16.msra.mxu1 %v4952_v19 }
 0x3ca   : > { %3905 = vmatprep.subr.bf16.mxu1 %v4535_v0 }
 0x3cc   : > { %3605 = vmatmul.mubr.msk.f32.vlgmr.msra.gmra.mrb[4].mxu1 %vm742_vm1, %v843_v3 }
 0x3cd   : > { %3907 = vmatpush3.bf16.msra.mxu1 %v4995_v54  ;;  %3615 = vmatprep.mubr.msk.f32.mxu1 %vm4536_vm0, %v4537_v1 }
 0x3ce   : > { %3908 = vmatprep.subr.bf16.mxu1 %v4535_v0 }
 0x3d1   : > { %3910 = vmatpush3.bf16.msra.mxu1 %v4999_v56 }
 0x3d2   : > { %3911 = vmatprep.subr.bf16.mxu1 %v4535_v0 }
 0x497   : > { %v982_v6 = vpop.f32.mrb[2].mxu1 }
 0x498   : > { %v4037_v7 = vadd.f32 %v5039_v5, %v982_v6  ;;  %v3595_v8 = vpop.f32.mrb[3].mxu1 }
 0x49a   : > { %4147 = vtanh.f32 %v4037_v7  ;;  %v3316_v16 = vmul.f32 -1.442695, %v4037_v7 }
 0x49f   : > { %v1077_v10 = vpop.f32.mrb[4].mxu1 }
 0x4a0   : > { %v1081_v11 = vadd.f32 %v1077_v10, %v690_v9  ;;  %v3606_v12 = vpop.f32.mrb[5].mxu1 }
 0x4a2   : > { %4149 = vtanh.f32 %v1081_v11  ;;  %v3318_v17 = vmul.f32 -1.442695, %v1081_v11 }
 0x4a3   : > { %4151 = vpow2.f32 %v3316_v16 }
 0x4a4   : > { %v4148_v13 = vpop.eup %4147  ;;  %4153 = vpow2.f32 %v3318_v17 }
 0x4a5   : > { %996 = vrot.lane.b32.xlu1 %v4148_v13, %s4538_s4 }
 0x4ac   : > { %v4150_v14 = vpop.eup %4149 }
 0x4ad   : > { %1091 = vrot.lane.b32.xlu0 %v4150_v14, %s4538_s4  ;;  %v4152_v18 = vpop.eup %4151 }
 0x4ae   : > { %v990_v20 = vadd.f32 1.0, %v4152_v18  ;;  %v4154_v21 = vpop.eup %4153 }
 0x4af   : > { %v1085_v22 = vadd.f32 1.0, %v4154_v21 }
 0x4b0   : > { %4155 = vrcp.f32 %v990_v20 }
 0x4b1   : > { %4157 = vrcp.f32 %v1085_v22 }
 0x4ba   : > { %v4156_v23 = vpop.eup %4155 }
 0x4bb   : > { %v4158_v26 = vpop.eup %4157  ;;  %v994_v29 = vmul.f32 0.0, %v4156_v23 }
 0x4bc   : > { %v1089_v32 = vmul.f32 %v4158_v26, %v4989_v50  ;;  %v5069_v50 = vpop.f32.mrb[4].mxu0 }
 0x4bd   : > { %v5071_v51 = vpop.f32.mrb[5].mxu0 }
 0x4be   : > { %v5094_v55 = vpop.f32.mrb[6].mxu0 }
 0x4bf   : > { %v5096_v57 = vpop.f32.mrb[7].mxu0 }
 0x517   : > { %v997_v24 = vpop.permute.xlu1 %996 }
 0x518   : > { %v999_v25 = vmul.f32 %v4156_v23, %v997_v24 }
 0x51a   : > { %1001 = vrot.lane.b32.xlu1 %v999_v25, %s4539_s17 }
 0x51f   : > { %v1092_v27 = vpop.permute.xlu0 %1091 }
 0x520   : > { %v1094_v28 = vmul.f32 %v4158_v26, %v1092_v27 }
 0x522   : > { %1096 = vrot.lane.b32.xlu0 %v1094_v28, %s4539_s17 }
 0x58c   : > { %v1002_v30 = vpop.permute.xlu1 %1001 }
 0x58d   : > { %v5048_v31 = vadd.f32 %v1002_v30, %v994_v29 }
 0x58f   : > { %4159 = vtanh.f32 %v5048_v31 }
 0x594   : > { %v1097_v33 = vpop.permute.xlu0 %1096 }
 0x595   : > { %v5052_v34 = vadd.f32 %v1097_v33, %v1089_v32 }
 0x597   : > { %4161 = vtanh.f32 %v5052_v34 }
 0x599   : > { %v4160_v39 = vpop.eup %4159 }
 0x59a   : > { %1007 = vrot.lane.b32.xlu1 %v4160_v39, %s4538_s4 }
 0x5a1   : > { %v4162_v41 = vpop.eup %4161 }
 0x5a2   : > { %1102 = vrot.lane.b32.xlu0 %v4162_v41, %s4538_s4 }
 0x60c   : > { %v1008_v44 = vpop.permute.xlu1 %1007 }
 0x60d   : > { %v1010_v45 = vmul.f32 %v4156_v23, %v1008_v44 }
 0x60f   : > { %1182 = vrot.lane.b32.xlu1 %v1010_v45, %s4539_s17 }
 0x614   : > { %v1103_v46 = vpop.permute.xlu0 %1102 }
 0x615   : > { %v1105_v47 = vmul.f32 %v4158_v26, %v1103_v46 }
 0x617   : > { %1107 = vrot.lane.b32.xlu0 %v1105_v47, %s4539_s17 }
 0x681   : > { %v1183_v53 = vpop.permute.xlu1 %1182 }
 0x689   : > { %v1108_v52 = vpop.permute.xlu0 %1107 }
 0x68a   : > { %3616 = vmatmul.mubr.msk.f32.vlgmr.msra.gmra.mrb[6].mxu1 %vm742_vm1, %v1108_v52  ;;  %3638 = vmatmul.mubr.msk.f32.vlgmr.msra.gmra.mrb[8].mxu0 %vm742_vm1, %v1108_v52 }
 0x68b   : > { %3913 = vmatpush3.bf16.msra.mxu1 %v5008_v62  ;;  %3626 = vmatprep.mubr.msk.f32.mxu1 %vm4536_vm0, %v4537_v1 }
 0x68c   : > { %3914 = vmatprep.subr.bf16.mxu1 %v4535_v0  ;;  %3925 = vmatpush3.bf16.msra.mxu0 %v4995_v54 }
 0x68d   : > { %3926 = vmatprep.subr.bf16.mxu0 %v4535_v0  ;;  %3648 = vmatprep.mubr.msk.f32.mxu0 %vm4536_vm0, %v4537_v1 }
 0x68f   : > { %3916 = vmatpush3.bf16.msra.mxu1 %v5014_v4 }
 0x690   : > { %3935 = vmatprep.subr.bf16.mxu1 %v4535_v0  ;;  %3928 = vmatpush3.bf16.msra.mxu0 %v4999_v56 }
 0x691   : > { %3929 = vmatprep.subr.bf16.mxu0 %v4535_v0 }
 0x692   : > { %3627 = vmatmul.mubr.msk.f32.vlgmr.msra.gmra.mrb[6].mxu1 %vm742_vm1, %v1183_v53 }
 0x693   : > { %3937 = vmatpush3.bf16.msra.mxu1 %v4946_v15  ;;  %3670 = vmatprep.mubr.msk.f32.mxu1 %vm4536_vm0, %v4537_v1 }
 0x694   : > { %3938 = vmatprep.subr.bf16.mxu1 %v4535_v0 }
 0x697   : > { %3940 = vmatpush3.bf16.msra.mxu1 %v4952_v19 }
 0x698   : > { %3941 = vmatprep.subr.bf16.mxu1 %v4535_v0 }
 0x75d   : > { %v1347_v59 = vpop.f32.mrb[8].mxu0 }
 0x75e   : > { %v1351_v60 = vadd.f32 %v1347_v59, %v695_v58  ;;  %v3639_v61 = vpop.f32.mrb[9].mxu0 }
 0x760   : > { %4163 = vtanh.f32 %v1351_v60  ;;  %v3323_v8 = vmul.f32 -1.442695, %v1351_v60 }
 0x765   : > { %v1252_v63 = vpop.f32.mrb[6].mxu1 }
 0x766   : > { %v4038_v2 = vadd.f32 %v5039_v5, %v1252_v63  ;;  %v3628_v3 = vpop.f32.mrb[7].mxu1 }
 0x768   : > { %4165 = vtanh.f32 %v4038_v2  ;;  %v3321_v9 = vmul.f32 -1.442695, %v4038_v2 }
 0x769   : > { %4167 = vpow2.f32 %v3323_v8 }
 0x76a   : > { %v4164_v6 = vpop.eup %4163  ;;  %4169 = vpow2.f32 %v3321_v9 }
 0x76b   : > { %1361 = vrot.lane.b32.xlu0 %v4164_v6, %s4538_s4 }
 0x772   : > { %v4166_v7 = vpop.eup %4165 }
 0x773   : > { %1266 = vrot.lane.b32.xlu1 %v4166_v7, %s4538_s4  ;;  %v4168_v10 = vpop.eup %4167 }
 0x774   : > { %v1355_v11 = vadd.f32 1.0, %v4168_v10  ;;  %v4170_v12 = vpop.eup %4169 }
 0x775   : > { %v1260_v13 = vadd.f32 1.0, %v4170_v12 }
 0x776   : > { %4171 = vrcp.f32 %v1355_v11 }
 0x777   : > { %4173 = vrcp.f32 %v1260_v13 }
 0x780   : > { %v4172_v14 = vpop.eup %4171 }
 0x781   : > { %v4174_v18 = vpop.eup %4173  ;;  %v1359_v22 = vmul.f32 %v4172_v14, %v5052_v34 }
 0x782   : > { %v1264_v25 = vmul.f32 %v4174_v18, %v5048_v31 }
 0x7dd   : > { %v1362_v16 = vpop.permute.xlu0 %1361 }
 0x7de   : > { %v1364_v17 = vmul.f32 %v4172_v14, %v1362_v16 }
 0x7e0   : > { %1366 = vrot.lane.b32.xlu0 %v1364_v17, %s4539_s17 }
 0x7e5   : > { %v1267_v20 = vpop.permute.xlu1 %1266 }
 0x7e6   : > { %v1269_v21 = vmul.f32 %v4174_v18, %v1267_v20 }
 0x7e8   : > { %1271 = vrot.lane.b32.xlu1 %v1269_v21, %s4539_s17  ;;  %v705_v21 = vadd.f32 %v4982_v36, %v5071_v51 }
 0x852   : > { %v1367_v23 = vpop.permute.xlu0 %1366 }
 0x853   : > { %v5105_v24 = vadd.f32 %v1367_v23, %v1359_v22 }
 0x855   : > { %4175 = vtanh.f32 %v5105_v24 }
 0x85a   : > { %v1272_v26 = vpop.permute.xlu1 %1271 }
 0x85b   : > { %v5109_v27 = vadd.f32 %v1272_v26, %v1264_v25 }
 0x85d   : > { %4177 = vtanh.f32 %v5109_v27 }
 0x85f   : > { %v4176_v28 = vpop.eup %4175 }
 0x860   : > { %1372 = vrot.lane.b32.xlu0 %v4176_v28, %s4538_s4 }
 0x867   : > { %v4178_v29 = vpop.eup %4177 }
 0x868   : > { %1277 = vrot.lane.b32.xlu1 %v4178_v29, %s4538_s4 }
 0x8d2   : > { %v1373_v30 = vpop.permute.xlu0 %1372 }
 0x8d3   : > { %v1375_v32 = vmul.f32 %v4172_v14, %v1373_v30 }
 0x8d5   : > { %1377 = vrot.lane.b32.xlu0 %v1375_v32, %s4539_s17 }
 0x8da   : > { %v1278_v33 = vpop.permute.xlu1 %1277 }
 0x8db   : > { %v1280_v34 = vmul.f32 %v4174_v18, %v1278_v33 }
 0x8dd   : > { %1452 = vrot.lane.b32.xlu1 %v1280_v34, %s4539_s17 }
 0x947   : > { %v1378_v31 = vpop.permute.xlu0 %1377 }
 0x948   : > { %3649 = vmatmul.mubr.msk.f32.vlgmr.msra.gmra.mrb[10].mxu0 %vm742_vm1, %v1378_v31  ;;  %3671 = vmatmul.mubr.msk.f32.vlgmr.msra.gmra.mrb[8].mxu1 %vm742_vm1, %v1378_v31 }
 0x949   : > { %3931 = vmatpush3.bf16.msra.mxu0 %v5008_v62  ;;  %3659 = vmatprep.mubr.msk.f32.mxu0 %vm4536_vm0, %v4537_v1 }
 0x94a   : > { %3932 = vmatprep.subr.bf16.mxu0 %v4535_v0  ;;  %3943 = vmatpush3.bf16.msra.mxu1 %v4995_v54 }
 0x94b   : > { %3944 = vmatprep.subr.bf16.mxu1 %v4535_v0  ;;  %3681 = vmatprep.mubr.msk.f32.mxu1 %vm4536_vm0, %v4537_v1 }
 0x94d   : > { %3934 = vmatpush3.bf16.msra.mxu0 %v5014_v4 }
 0x94e   : > { %3953 = vmatprep.subr.bf16.mxu0 %v4535_v0  ;;  %3946 = vmatpush3.bf16.msra.mxu1 %v4999_v56 }
 0x94f   : > { %v1453_v35 = vpop.permute.xlu1 %1452  ;;  %3947 = vmatprep.subr.bf16.mxu1 %v4535_v0 }
 0x950   : > { %3660 = vmatmul.mubr.msk.f32.vlgmr.msra.gmra.mrb[10].mxu0 %vm742_vm1, %v1453_v35 }
 0x951   : > { %3955 = vmatpush3.bf16.msra.mxu0 %v4946_v15  ;;  %3703 = vmatprep.mubr.msk.f32.mxu0 %vm4536_vm0, %v4537_v1 }
 0x952   : > { %3956 = vmatprep.subr.bf16.mxu0 %v4535_v0 }
 0x955   : > { %3958 = vmatpush3.bf16.msra.mxu0 %v4952_v19 }
 0x956   : > { %3959 = vmatprep.subr.bf16.mxu0 %v4535_v0 }
 0xa1b   : > { %v1617_v38 = vpop.f32.mrb[8].mxu1 }
 0xa1c   : > { %v1621_v39 = vadd.f32 %v1617_v38, %v700_v37  ;;  %v3672_v40 = vpop.f32.mrb[9].mxu1 }
 0xa1e   : > { %4179 = vtanh.f32 %v1621_v39  ;;  %v3328_v46 = vmul.f32 -1.442695, %v1621_v39 }
 0xa23   : > { %v1522_v41 = vpop.f32.mrb[10].mxu0 }
 0xa24   : > { %v4039_v42 = vadd.f32 %v5039_v5, %v1522_v41  ;;  %v3661_v43 = vpop.f32.mrb[11].mxu0 }
 0xa26   : > { %4181 = vtanh.f32 %v4039_v42  ;;  %v3326_v47 = vmul.f32 -1.442695, %v4039_v42 }
 0xa27   : > { %4183 = vpow2.f32 %v3328_v46 }
 0xa28   : > { %v4180_v44 = vpop.eup %4179  ;;  %4185 = vpow2.f32 %v3326_v47 }
 0xa29   : > { %1631 = vrot.lane.b32.xlu0 %v4180_v44, %s4538_s4 }
 0xa30   : > { %v4182_v45 = vpop.eup %4181 }
 0xa31   : > { %1536 = vrot.lane.b32.xlu1 %v4182_v45, %s4538_s4  ;;  %v4184_v48 = vpop.eup %4183 }
 0xa32   : > { %v1625_v49 = vadd.f32 1.0, %v4184_v48  ;;  %v4186_v52 = vpop.eup %4185 }
 0xa33   : > { %v1530_v53 = vadd.f32 1.0, %v4186_v52 }
 0xa34   : > { %4187 = vrcp.f32 %v1625_v49 }
 0xa35   : > { %4189 = vrcp.f32 %v1530_v53 }
 0xa3e   : > { %v4188_v58 = vpop.eup %4187 }
 0xa3f   : > { %v4190_v61 = vpop.eup %4189  ;;  %v1629_v3 = vmul.f32 %v4188_v58, %v5105_v24 }
 0xa40   : > { %v1534_v8 = vmul.f32 %v4190_v61, %v5109_v27 }
 0xa9b   : > { %v1632_v59 = vpop.permute.xlu0 %1631 }
 0xa9c   : > { %v1634_v60 = vmul.f32 %v4188_v58, %v1632_v59 }
 0xa9e   : > { %1636 = vrot.lane.b32.xlu0 %v1634_v60, %s4539_s17 }
 0xaa3   : > { %v1537_v63 = vpop.permute.xlu1 %1536 }
 0xaa4   : > { %v1539_v2 = vmul.f32 %v4190_v61, %v1537_v63  ;;  %v710_v63 = vadd.f32 %v5069_v50, %v4982_v36 }
 0xaa6   : > { %1541 = vrot.lane.b32.xlu1 %v1539_v2, %s4539_s17 }
 0xb10   : > { %v1637_v6 = vpop.permute.xlu0 %1636 }
 0xb11   : > { %v5145_v7 = vadd.f32 %v1637_v6, %v1629_v3 }
 0xb13   : > { %4191 = vtanh.f32 %v5145_v7 }
 0xb18   : > { %v1542_v9 = vpop.permute.xlu1 %1541 }
 0xb19   : > { %v5149_v10 = vadd.f32 %v1542_v9, %v1534_v8 }
 0xb1b   : > { %4193 = vtanh.f32 %v5149_v10 }
 0xb1d   : > { %v4192_v11 = vpop.eup %4191 }
 0xb1e   : > { %1642 = vrot.lane.b32.xlu0 %v4192_v11, %s4538_s4 }
 0xb25   : > { %v4194_v12 = vpop.eup %4193 }
 0xb26   : > { %1547 = vrot.lane.b32.xlu1 %v4194_v12, %s4538_s4 }
 0xb90   : > { %v1643_v13 = vpop.permute.xlu0 %1642 }
 0xb91   : > { %v1645_v14 = vmul.f32 %v4188_v58, %v1643_v13 }
 0xb93   : > { %1647 = vrot.lane.b32.xlu0 %v1645_v14, %s4539_s17 }
 0xb98   : > { %v1548_v16 = vpop.permute.xlu1 %1547 }
 0xb99   : > { %v1550_v17 = vmul.f32 %v4190_v61, %v1548_v16 }
 0xb9b   : > { %1722 = vrot.lane.b32.xlu1 %v1550_v17, %s4539_s17 }
 0xc05   : > { %v1648_v18 = vpop.permute.xlu0 %1647 }
 0xc06   : > { %3682 = vmatmul.mubr.msk.f32.vlgmr.msra.gmra.mrb[10].mxu1 %vm742_vm1, %v1648_v18  ;;  %3704 = vmatmul.mubr.msk.f32.vlgmr.msra.gmra.mrb[12].mxu0 %vm742_vm1, %v1648_v18 }
 0xc07   : > { %3949 = vmatpush3.bf16.msra.mxu1 %v5008_v62  ;;  %3692 = vmatprep.mubr.msk.f32.mxu1 %vm4536_vm0, %v4537_v1 }
 0xc08   : > { %3950 = vmatprep.subr.bf16.mxu1 %v4535_v0  ;;  %3961 = vmatpush3.bf16.msra.mxu0 %v4995_v54 }
 0xc09   : > { %3962 = vmatprep.subr.bf16.mxu0 %v4535_v0  ;;  %3714 = vmatprep.mubr.msk.f32.mxu0 %vm4536_vm0, %v4537_v1 }
 0xc0b   : > { %3952 = vmatpush3.bf16.msra.mxu1 %v5014_v4 }
 0xc0c   : > { %3971 = vmatprep.subr.bf16.mxu1 %v4535_v0  ;;  %3964 = vmatpush3.bf16.msra.mxu0 %v4999_v56 }
 0xc0d   : > { %v1723_v20 = vpop.permute.xlu1 %1722  ;;  %3965 = vmatprep.subr.bf16.mxu0 %v4535_v0 }
 0xc0e   : > { %3693 = vmatmul.mubr.msk.f32.vlgmr.msra.gmra.mrb[10].mxu1 %vm742_vm1, %v1723_v20 }
 0xc0f   : > { %3973 = vmatpush3.bf16.msra.mxu1 %v4946_v15  ;;  %3736 = vmatprep.mubr.msk.f32.mxu1 %vm4536_vm0, %v4537_v1 }
 0xc10   : > { %3974 = vmatprep.subr.bf16.mxu1 %v4535_v0 }
 0xc13   : > { %3976 = vmatpush3.bf16.msra.mxu1 %v4952_v19 }
 0xc14   : > { %3977 = vmatprep.subr.bf16.mxu1 %v4535_v0 }
 0xcd9   : > { %v1887_v22 = vpop.f32.mrb[12].mxu0 }
 0xcda   : > { %v1891_v23 = vadd.f32 %v1887_v22, %v705_v21  ;;  %v3705_v24 = vpop.f32.mrb[13].mxu0 }
 0xcdc   : > { %4195 = vtanh.f32 %v1891_v23  ;;  %v3333_v30 = vmul.f32 -1.442695, %v1891_v23 }
 0xce1   : > { %v1792_v25 = vpop.f32.mrb[10].mxu1 }
 0xce2   : > { %v4040_v26 = vadd.f32 %v5039_v5, %v1792_v25  ;;  %v3694_v27 = vpop.f32.mrb[11].mxu1 }
 0xce4   : > { %4197 = vtanh.f32 %v4040_v26  ;;  %v3331_v32 = vmul.f32 -1.442695, %v4040_v26 }
 0xce5   : > { %4199 = vpow2.f32 %v3333_v30 }
 0xce6   : > { %v4196_v28 = vpop.eup %4195  ;;  %4201 = vpow2.f32 %v3331_v32 }
 0xce7   : > { %1901 = vrot.lane.b32.xlu0 %v4196_v28, %s4538_s4 }
 0xcee   : > { %v4198_v29 = vpop.eup %4197 }
 0xcef   : > { %1806 = vrot.lane.b32.xlu1 %v4198_v29, %s4538_s4  ;;  %v4200_v51 = vpop.eup %4199 }
 0xcf0   : > { %v1895_v33 = vadd.f32 1.0, %v4200_v51  ;;  %v4202_v34 = vpop.eup %4201 }
 0xcf1   : > { %v1800_v31 = vadd.f32 1.0, %v4202_v34 }
 0xcf2   : > { %4203 = vrcp.f32 %v1895_v33 }
 0xcf3   : > { %4205 = vrcp.f32 %v1800_v31 }
 0xcfc   : > { %v4204_v35 = vpop.eup %4203 }
 0xcfd   : > { %v4206_v39 = vpop.eup %4205  ;;  %v1899_v42 = vmul.f32 %v4204_v35, %v5145_v7 }
 0xcfe   : > { %v1804_v45 = vmul.f32 %v4206_v39, %v5149_v10 }
 0xd59   : > { %v1902_v37 = vpop.permute.xlu0 %1901 }
 0xd5a   : > { %v1904_v38 = vmul.f32 %v4204_v35, %v1902_v37 }
 0xd5c   : > { %1906 = vrot.lane.b32.xlu0 %v1904_v38, %s4539_s17 }
 0xd61   : > { %v1807_v40 = vpop.permute.xlu1 %1806 }
 0xd62   : > { %v1809_v41 = vmul.f32 %v4206_v39, %v1807_v40 }
 0xd64   : > { %1811 = vrot.lane.b32.xlu1 %v1809_v41, %s4539_s17 }
 0xdce   : > { %v1907_v43 = vpop.permute.xlu0 %1906 }
 0xdcf   : > { %v5185_v44 = vadd.f32 %v1907_v43, %v1899_v42 }
 0xdd1   : > { %4207 = vtanh.f32 %v5185_v44 }
 0xdd6   : > { %v1812_v46 = vpop.permute.xlu1 %1811 }
 0xdd7   : > { %v5189_v47 = vadd.f32 %v1812_v46, %v1804_v45 }
 0xdd9   : > { %4209 = vtanh.f32 %v5189_v47 }
 0xddb   : > { %v4208_v48 = vpop.eup %4207 }
 0xddc   : > { %1912 = vrot.lane.b32.xlu0 %v4208_v48, %s4538_s4 }
 0xde3   : > { %v4210_v49 = vpop.eup %4209 }
 0xde4   : > { %1817 = vrot.lane.b32.xlu1 %v4210_v49, %s4538_s4 }
 0xe4e   : > { %v1913_v52 = vpop.permute.xlu0 %1912 }
 0xe4f   : > { %v1915_v53 = vmul.f32 %v4204_v35, %v1913_v52 }
 0xe51   : > { %1917 = vrot.lane.b32.xlu0 %v1915_v53, %s4539_s17 }
 0xe56   : > { %v1818_v58 = vpop.permute.xlu1 %1817 }
 0xe57   : > { %v1820_v59 = vmul.f32 %v4206_v39, %v1818_v58  ;;  %v715_v39 = vadd.f32 %v4982_v36, %v5096_v57 }
 0xe59   : > { %1992 = vrot.lane.b32.xlu1 %v1820_v59, %s4539_s17 }
 0xec3   : > { %v1918_v60 = vpop.permute.xlu0 %1917 }
 0xec4   : > { %3715 = vmatmul.mubr.msk.f32.vlgmr.msra.gmra.mrb[14].mxu0 %vm742_vm1, %v1918_v60  ;;  %3737 = vmatmul.mubr.msk.f32.vlgmr.msra.gmra.mrb[12].mxu1 %vm742_vm1, %v1918_v60 }
 0xec5   : > { %3967 = vmatpush3.bf16.msra.mxu0 %v5008_v62  ;;  %3725 = vmatprep.mubr.msk.f32.mxu0 %vm4536_vm0, %v4537_v1 }
 0xec6   : > { %3968 = vmatprep.subr.bf16.mxu0 %v4535_v0  ;;  %3979 = vmatpush3.bf16.msra.mxu1 %v4995_v54 }
 0xec7   : > { %3980 = vmatprep.subr.bf16.mxu1 %v4535_v0  ;;  %3747 = vmatprep.mubr.msk.f32.mxu1 %vm4536_vm0, %v4537_v1 }
 0xec9   : > { %3970 = vmatpush3.bf16.msra.mxu0 %v5014_v4 }
 0xeca   : > { %3989 = vmatprep.subr.bf16.mxu0 %v4535_v0  ;;  %3982 = vmatpush3.bf16.msra.mxu1 %v4999_v56 }
 0xecb   : > { %v1993_v61 = vpop.permute.xlu1 %1992  ;;  %3983 = vmatprep.subr.bf16.mxu1 %v4535_v0 }
 0xecc   : > { %3726 = vmatmul.mubr.msk.f32.vlgmr.msra.gmra.mrb[14].mxu0 %vm742_vm1, %v1993_v61 }
 0xecd   : > { %3991 = vmatpush3.bf16.msra.mxu0 %v4946_v15  ;;  %3769 = vmatprep.mubr.msk.f32.mxu0 %vm4536_vm0, %v4537_v1 }
 0xece   : > { %3992 = vmatprep.subr.bf16.mxu0 %v4535_v0 }
 0xed1   : > { %3994 = vmatpush3.bf16.msra.mxu0 %v4952_v19 }
 0xed2   : > { %3995 = vmatprep.subr.bf16.mxu0 %v4535_v0 }
 0xf97   : > { %v2157_v2 = vpop.f32.mrb[12].mxu1 }
 0xf98   : > { %v2161_v3 = vadd.f32 %v2157_v2, %v710_v63  ;;  %v3738_v6 = vpop.f32.mrb[13].mxu1 }
 0xf9a   : > { %4211 = vtanh.f32 %v2161_v3  ;;  %v3338_v12 = vmul.f32 -1.442695, %v2161_v3 }
 0xf9f   : > { %v2062_v7 = vpop.f32.mrb[14].mxu0 }
 0xfa0   : > { %v4041_v8 = vadd.f32 %v5039_v5, %v2062_v7  ;;  %v3727_v9 = vpop.f32.mrb[15].mxu0 }
 0xfa2   : > { %4213 = vtanh.f32 %v4041_v8  ;;  %v3336_v13 = vmul.f32 -1.442695, %v4041_v8 }
 0xfa3   : > { %4215 = vpow2.f32 %v3338_v12 }
 0xfa4   : > { %v4212_v10 = vpop.eup %4211  ;;  %4217 = vpow2.f32 %v3336_v13 }
 0xfa5   : > { %2171 = vrot.lane.b32.xlu0 %v4212_v10, %s4538_s4 }
 0xfac   : > { %v4214_v11 = vpop.eup %4213 }
 0xfad   : > { %2076 = vrot.lane.b32.xlu1 %v4214_v11, %s4538_s4  ;;  %v4216_v50 = vpop.eup %4215 }
 0xfae   : > { %v2165_v14 = vadd.f32 1.0, %v4216_v50  ;;  %v4218_v16 = vpop.eup %4217 }
 0xfaf   : > { %v2070_v17 = vadd.f32 1.0, %v4218_v16 }
 0xfb0   : > { %4219 = vrcp.f32 %v2165_v14 }
 0xfb1   : > { %4221 = vrcp.f32 %v2070_v17 }
 0xfba   : > { %v4220_v18 = vpop.eup %4219 }
 0xfbb   : > { %v4222_v22 = vpop.eup %4221  ;;  %v2169_v25 = vmul.f32 %v4220_v18, %v5185_v44 }
 0xfbc   : > { %v2074_v28 = vmul.f32 %v4222_v22, %v5189_v47 }
0x1017   : > { %v2172_v20 = vpop.permute.xlu0 %2171 }
0x1018   : > { %v2174_v21 = vmul.f32 %v4220_v18, %v2172_v20 }
0x101a   : > { %2176 = vrot.lane.b32.xlu0 %v2174_v21, %s4539_s17 }
0x101f   : > { %v2077_v23 = vpop.permute.xlu1 %2076 }
0x1020   : > { %v2079_v24 = vmul.f32 %v4222_v22, %v2077_v23 }
0x1022   : > { %2081 = vrot.lane.b32.xlu1 %v2079_v24, %s4539_s17 }
0x108c   : > { %v2177_v26 = vpop.permute.xlu0 %2176 }
0x108d   : > { %v5225_v27 = vadd.f32 %v2177_v26, %v2169_v25 }
0x108f   : > { %4223 = vtanh.f32 %v5225_v27 }
0x1094   : > { %v2082_v29 = vpop.permute.xlu1 %2081 }
0x1095   : > { %v5229_v30 = vadd.f32 %v2082_v29, %v2074_v28 }
0x1097   : > { %4225 = vtanh.f32 %v5229_v30 }
0x1099   : > { %v4224_v32 = vpop.eup %4223 }
0x109a   : > { %2182 = vrot.lane.b32.xlu0 %v4224_v32, %s4538_s4 }
0x10a1   : > { %v4226_v51 = vpop.eup %4225 }
0x10a2   : > { %2087 = vrot.lane.b32.xlu1 %v4226_v51, %s4538_s4 }
0x110c   : > { %v2183_v33 = vpop.permute.xlu0 %2182 }
0x110d   : > { %v2185_v34 = vmul.f32 %v4220_v18, %v2183_v33 }
0x110f   : > { %2187 = vrot.lane.b32.xlu0 %v2185_v34, %s4539_s17 }
0x1114   : > { %v2088_v31 = vpop.permute.xlu1 %2087 }
0x1115   : > { %v2090_v35 = vmul.f32 %v4222_v22, %v2088_v31 }
0x1117   : > { %2262 = vrot.lane.b32.xlu1 %v2090_v35, %s4539_s17 }
0x1181   : > { %v2188_v37 = vpop.permute.xlu0 %2187 }
0x1182   : > { %3748 = vmatmul.mubr.msk.f32.vlgmr.msra.gmra.mrb[14].mxu1 %vm742_vm1, %v2188_v37  ;;  %3770 = vmatmul.mubr.msk.f32.vlgmr.msra.gmra.mrb[16].mxu0 %vm742_vm1, %v2188_v37 }
0x1183   : > { %3985 = vmatpush3.bf16.msra.mxu1 %v5008_v62  ;;  %3758 = vmatprep.mubr.msk.f32.mxu1 %vm4536_vm0, %v4537_v1 }
0x1184   : > { %3986 = vmatprep.subr.bf16.mxu1 %v4535_v0  ;;  %3997 = vmatpush3.bf16.msra.mxu0 %v4995_v54 }
0x1185   : > { %3998 = vmatprep.subr.bf16.mxu0 %v4535_v0  ;;  %3780 = vmatprep.mubr.msk.f32.mxu0 %vm4536_vm0, %v4537_v1 }
0x1187   : > { %3988 = vmatpush3.bf16.msra.mxu1 %v5014_v4 }
0x1188   : > { %4007 = vmatprep.subr.bf16.mxu1 %v4535_v0  ;;  %4000 = vmatpush3.bf16.msra.mxu0 %v4999_v56 }
0x1189   : > { %v2263_v38 = vpop.permute.xlu1 %2262  ;;  %4001 = vmatprep.subr.bf16.mxu0 %v4535_v0 }
0x118a   : > { %3759 = vmatmul.mubr.msk.f32.vlgmr.msra.gmra.mrb[14].mxu1 %vm742_vm1, %v2263_v38 }
0x118b   : > { %4009 = vmatpush3.bf16.msra.mxu1 %v4946_v15  ;;  %3802 = vmatprep.mubr.msk.f32.mxu1 %vm4536_vm0, %v4537_v1 }
0x118c   : > { %4010 = vmatprep.subr.bf16.mxu1 %v4535_v0 }
0x118f   : > { %4012 = vmatpush3.bf16.msra.mxu1 %v4952_v19 }
0x1190   : > { %4013 = vmatprep.subr.bf16.mxu1 %v4535_v0 }
0x1255   : > { %v2427_v40 = vpop.f32.mrb[16].mxu0 }
0x1256   : > { %v2431_v41 = vadd.f32 %v2427_v40, %v715_v39  ;;  %v3771_v42 = vpop.f32.mrb[17].mxu0 }
0x1258   : > { %4227 = vtanh.f32 %v2431_v41  ;;  %v3343_v19 = vmul.f32 -1.442695, %v2431_v41 }
0x125d   : > { %v2332_v43 = vpop.f32.mrb[14].mxu1 }
0x125e   : > { %v4042_v44 = vadd.f32 %v5039_v5, %v2332_v43  ;;  %v3760_v15 = vpop.f32.mrb[15].mxu1 }
0x1260   : > { %4229 = vtanh.f32 %v4042_v44  ;;  %v3341_v47 = vmul.f32 -1.442695, %v4042_v44 }
0x1261   : > { %4231 = vpow2.f32 %v3343_v19 }
0x1262   : > { %v4228_v45 = vpop.eup %4227  ;;  %4233 = vpow2.f32 %v3341_v47 }
0x1263   : > { %2441 = vrot.lane.b32.xlu0 %v4228_v45, %s4538_s4 }
0x126a   : > { %v4230_v46 = vpop.eup %4229 }
0x126b   : > { %2346 = vrot.lane.b32.xlu1 %v4230_v46, %s4538_s4  ;;  %v4232_v57 = vpop.eup %4231 }
0x126c   : > { %v2435_v48 = vadd.f32 1.0, %v4232_v57  ;;  %v4234_v49 = vpop.eup %4233 }
0x126d   : > { %v2340_v52 = vadd.f32 1.0, %v4234_v49 }
0x126e   : > { %4235 = vrcp.f32 %v2435_v48 }
0x126f   : > { %4237 = vrcp.f32 %v2340_v52 }
0x1278   : > { %v4236_v53 = vpop.eup %4235 }
0x1279   : > { %v4238_v60 = vpop.eup %4237  ;;  %v2439_v2 = vmul.f32 %v4236_v53, %v5225_v27 }
0x127a   : > { %v2344_v7 = vmul.f32 %v4238_v60, %v5229_v30 }
0x12d5   : > { %v2442_v58 = vpop.permute.xlu0 %2441 }
0x12d6   : > { %v2444_v59 = vmul.f32 %v4236_v53, %v2442_v58 }
0x12d8   : > { %2446 = vrot.lane.b32.xlu0 %v2444_v59, %s4539_s17 }
0x12dd   : > { %v2347_v61 = vpop.permute.xlu1 %2346 }
0x12de   : > { %v2349_v63 = vmul.f32 %v4238_v60, %v2347_v61 }
0x12e0   : > { %2351 = vrot.lane.b32.xlu1 %v2349_v63, %s4539_s17 }
0x134a   : > { %v2447_v3 = vpop.permute.xlu0 %2446 }
0x134b   : > { %v5265_v6 = vadd.f32 %v2447_v3, %v2439_v2  ;;  %v2905_v2 = vld [vmem:[%s4927_s9 + $0x20] sm:$0xff]  ;;  %v2906_v3 = vld [vmem:[%s4927_s9 + $0x28] sm:$0xff] }
0x134d   : > { %4239 = vtanh.f32 %v5265_v6 }
0x1352   : > { %v2352_v8 = vpop.permute.xlu1 %2351 }
0x1353   : > { %v5269_v9 = vadd.f32 %v2352_v8, %v2344_v7  ;;  %v4026_v7 = vpack.c.bf16 %v2906_v3, %v2905_v2  ;;  %v2908_v8 = vld [vmem:[%s4927_s9 + $0x38] sm:$0xff] }
0x1355   : > { %4241 = vtanh.f32 %v5269_v9 }
0x1357   : > { %v4240_v10 = vpop.eup %4239 }
0x1358   : > { %2452 = vrot.lane.b32.xlu0 %v4240_v10, %s4538_s4 }
0x135f   : > { %v4242_v11 = vpop.eup %4241 }
0x1360   : > { %2357 = vrot.lane.b32.xlu1 %v4242_v11, %s4538_s4 }
0x13ca   : > { %v2453_v12 = vpop.permute.xlu0 %2452 }
0x13cb   : > { %v2455_v13 = vmul.f32 %v4236_v53, %v2453_v12 }
0x13cd   : > { %2457 = vrot.lane.b32.xlu0 %v2455_v13, %s4539_s17  ;;  %v2901_v13 = vld [vmem:[%s4927_s9] sm:$0xff] }
0x13d2   : > { %v2358_v50 = vpop.permute.xlu1 %2357 }
0x13d3   : > { %v2360_v14 = vmul.f32 %v4238_v60, %v2358_v50  ;;  %v2902_v50 = vld [vmem:[%s4927_s9 + $0x8] sm:$0xff] }
0x13d5   : > { %2532 = vrot.lane.b32.xlu1 %v2360_v14, %s4539_s17  ;;  %v4032_v14 = vpack.c.bf16 %v2902_v50, %v2901_v13 }
0x143f   : > { %v2458_v16 = vpop.permute.xlu0 %2457 }
0x1440   : > { %3781 = vmatmul.mubr.msk.f32.vlgmr.msra.gmra.mrb[18].mxu0 %vm742_vm1, %v2458_v16  ;;  %3803 = vmatmul.mubr.msk.f32.vlgmr.msra.gmra.mrb[16].mxu1 %vm742_vm1, %v2458_v16  ;;  %v2903_v16 = vld [vmem:[%s4927_s9 + $0x10] sm:$0xff] }
0x1441   : > { %4003 = vmatpush3.bf16.msra.mxu0 %v5008_v62  ;;  %3791 = vmatprep.mubr.msk.f32.mxu0 %vm4536_vm0, %v4537_v1 }
0x1442   : > { %4004 = vmatprep.subr.bf16.mxu0 %v4535_v0  ;;  %4015 = vmatpush3.bf16.msra.mxu1 %v4995_v54  ;;  %v720_v54 = vadd.f32 %v5094_v55, %v4982_v36 }
0x1443   : > { %4016 = vmatprep.subr.bf16.mxu1 %v4535_v0  ;;  %3813 = vmatprep.mubr.msk.f32.mxu1 %vm4536_vm0, %v4537_v1 }
0x1445   : > { %4006 = vmatpush3.bf16.msra.mxu0 %v5014_v4 }
0x1446   : > { %4018 = vmatpush3.bf16.msra.mxu1 %v4999_v56  ;;  %4025 = vmatprep.subr.bf16.mxu0 %v4535_v0 }
0x1447   : > { %v2533_v17 = vpop.permute.xlu1 %2532  ;;  %4019 = vmatprep.subr.bf16.mxu1 %v4535_v0 }
0x1448   : > { %3792 = vmatmul.mubr.msk.f32.vlgmr.msra.gmra.mrb[18].mxu0 %vm742_vm1, %v2533_v17  ;;  %v2904_v17 = vld [vmem:[%s4927_s9 + $0x18] sm:$0xff] }
0x1449   : > { %3835 = vmatprep.mubr.msk.f32.mxu0 %vm4536_vm0, %v4537_v1  ;;  %4027 = vmatpush3.bf16.msra.mxu0 %v4026_v7 }
0x144a   : > { %4028 = vmatprep.subr.bf16.mxu0 %v4535_v0 }
0x1513   : > { %v2697_v18 = vpop.f32.mrb[16].mxu1 }
0x1514   : > { %v2701_v20 = vadd.f32 %v2697_v18, %v720_v54  ;;  %v3804_v21 = vpop.f32.mrb[17].mxu1  ;;  %v4035_v18 = vpack.c.bf16 %v2904_v17, %v2903_v16 }
0x1516   : > { %4243 = vtanh.f32 %v2701_v20  ;;  %v3348_v26 = vmul.f32 -1.442695, %v2701_v20 }
0x151b   : > { %v2602_v22 = vpop.f32.mrb[18].mxu0 }
0x151c   : > { %v4043_v56 = vadd.f32 %v5039_v5, %v2602_v22  ;;  %v3793_v23 = vpop.f32.mrb[19].mxu0 }
0x151e   : > { %4245 = vtanh.f32 %v4043_v56  ;;  %v3346_v27 = vmul.f32 -1.442695, %v4043_v56  ;;  %v3354_v56 = vld [vmem:[%s586_s15] ss:$0 sm:$0xff] }
0x151f   : > { %4247 = vpow2.f32 %v3348_v26 }
0x1520   : > { %v4244_v24 = vpop.eup %4243  ;;  %4249 = vpow2.f32 %v3346_v27 }
0x1521   : > { %2711 = vrot.lane.b32.xlu0 %v4244_v24, %s4538_s4 }
0x1528   : > { %v4246_v25 = vpop.eup %4245 }
0x1529   : > { %2616 = vrot.lane.b32.xlu1 %v4246_v25, %s4538_s4  ;;  %v4248_v36 = vpop.eup %4247 }
0x152a   : > { %v2705_v55 = vadd.f32 1.0, %v4248_v36  ;;  %v4250_v28 = vpop.eup %4249 }
0x152b   : > { %v2610_v29 = vadd.f32 1.0, %v4250_v28 }
0x152c   : > { %4251 = vrcp.f32 %v2705_v55 }
0x152d   : > { %4253 = vrcp.f32 %v2610_v29 }
0x1536   : > { %v4252_v30 = vpop.eup %4251 }
0x1537   : > { %v4254_v33 = vpop.eup %4253  ;;  %v2709_v35 = vmul.f32 %v4252_v30, %v5265_v6  ;;  %v2907_v6 = vld [vmem:[%s4927_s9 + $0x30] sm:$0xff]  ;;  %s5342_s9 = scalar_lea.hbm %s5446_s20, %s3356_s16 }
0x1538   : > { %v2614_v39 = vmul.f32 %v4254_v33, %v5269_v9  ;;  %v4029_v9 = vpack.c.bf16 %v2908_v8, %v2907_v6 }
0x153a   : > { %4030 = vmatpush3.bf16.msra.mxu0 %v4029_v9 }
0x153b   : > { %4031 = vmatprep.subr.bf16.mxu0 %v4535_v0 }
0x1593   : > { %v2712_v32 = vpop.permute.xlu0 %2711 }
0x1594   : > { %v2714_v51 = vmul.f32 %v4252_v30, %v2712_v32 }
0x1596   : > { %2716 = vrot.lane.b32.xlu0 %v2714_v51, %s4539_s17 }
0x159b   : > { %v2617_v34 = vpop.permute.xlu1 %2616 }
0x159c   : > { %v2619_v31 = vmul.f32 %v4254_v33, %v2617_v34 }
0x159e   : > { %2621 = vrot.lane.b32.xlu1 %v2619_v31, %s4539_s17 }
0x1608   : > { %v2717_v37 = vpop.permute.xlu0 %2716 }
0x1609   : > { %v2719_v38 = vadd.f32 %v2717_v37, %v2709_v35 }
0x160b   : > { %4255 = vtanh.f32 %v2719_v38 }
0x1610   : > { %v2622_v40 = vpop.permute.xlu1 %2621 }
0x1611   : > { %v2624_v41 = vadd.f32 %v2622_v40, %v2614_v39 }
0x1613   : > { %4257 = vtanh.f32 %v2624_v41 }
0x1615   : > { %v4256_v42 = vpop.eup %4255 }
0x1616   : > { %2722 = vrot.lane.b32.xlu0 %v4256_v42, %s4538_s4 }
0x161d   : > { %v4258_v43 = vpop.eup %4257 }
0x161e   : > { %2627 = vrot.lane.b32.xlu1 %v4258_v43, %s4538_s4 }
0x1688   : > { %v2723_v44 = vpop.permute.xlu0 %2722 }
0x1689   : > { %v2725_v15 = vmul.f32 %v4252_v30, %v2723_v44 }
0x168b   : > { %2727 = vrot.lane.b32.xlu0 %v2725_v15, %s4539_s17 }
0x1690   : > { %v2628_v45 = vpop.permute.xlu1 %2627 }
0x1691   : > { %v2630_v46 = vmul.f32 %v4254_v33, %v2628_v45 }
0x1693   : > { %2802 = vrot.lane.b32.xlu1 %v2630_v46, %s4539_s17 }
0x16fd   : > { %v2728_v19 = vpop.permute.xlu0 %2727 }
0x16fe   : > { %3814 = vmatmul.mubr.msk.f32.vlgmr.msra.gmra.mrb[18].mxu1 %vm742_vm1, %v2728_v19 }
0x16ff   : > { %4021 = vmatpush3.bf16.msra.mxu1 %v5008_v62  ;;  %3824 = vmatprep.mubr.msk.f32.mxu1 %vm4536_vm0, %v4537_v1 }
0x1700   : > { %4022 = vmatprep.subr.bf16.mxu1 %v4535_v0 }
0x1703   : > { %4024 = vmatpush3.bf16.msra.mxu1 %v5014_v4 }
0x1705   : > { %v2803_v47 = vpop.permute.xlu1 %2802 }
0x1706   : > { %3825 = vmatmul.mubr.msk.f32.vlgmr.msra.gmra.mrb[18].mxu1 %vm742_vm1, %v2803_v47 }
0x17d9   : > { %v2872_v57 = vpop.f32.mrb[18].mxu1 }
0x17da   : > { %v4044_v48 = vadd.f32 %v5039_v5, %v2872_v57  ;;  %v3826_v49 = vpop.f32.mrb[19].mxu1 }
0x17dc   : > { %4259 = vtanh.f32 %v4044_v48  ;;  %v3351_v62 = vmul.f32 -1.442695, %v4044_v48 }
0x17de   : > { %4261 = vpow2.f32 %v3351_v62 }
0x17e6   : > { %v4260_v52 = vpop.eup %4259 }
0x17e7   : > { %2886 = vrot.lane.b32.xlu0 %v4260_v52, %s4538_s4 }
0x17e8   : > { %v4262_v53 = vpop.eup %4261 }
0x17e9   : > { %v2880_v58 = vadd.f32 1.0, %v4262_v53 }
0x17eb   : > { %4263 = vrcp.f32 %v2880_v58 }
0x17f5   : > { %v4264_v4 = vpop.eup %4263 }
0x17f6   : > { %v2884_v5 = vmul.f32 %v4264_v4, %v2624_v41 }
0x1859   : > { %v2887_v59 = vpop.permute.xlu0 %2886 }
0x185a   : > { %v2889_v60 = vmul.f32 %v4264_v4, %v2887_v59 }
0x185c   : > { %2891 = vrot.lane.b32.xlu1 %v2889_v60, %s4539_s17 }
0x18ce   : > { %v2892_v61 = vpop.permute.xlu1 %2891 }
0x18cf   : > { %v2894_v63 = vadd.f32 %v2892_v61, %v2884_v5 }
0x18d1   : > { %4265 = vtanh.f32 %v2894_v63 }
0x18db   : > { %v4266_v10 = vpop.eup %4265 }
0x18dc   : > { %2897 = vrot.lane.b32.xlu0 %v4266_v10, %s4538_s4 }
0x194e   : > { %v2898_v11 = vpop.permute.xlu0 %2897 }
0x194f   : > { %v2900_v12 = vmul.f32 %v4264_v4, %v2898_v11 }
0x1951   : > { %2910 = vrot.lane.b32.xlu1 %v2900_v12, %s4539_s17 }
0x19c3   : > { %v2911_v54 = vpop.permute.xlu1 %2910 }
0x19c4   : > { %3836 = vmatmul.mubr.msk.f32.vlgmr.msra.gmra.mrb[20].mxu0 %vm742_vm1, %v2911_v54 }
0x19c5   : > { %4033 = vmatpush3.bf16.msra.mxu0 %v4032_v14  ;;  %3846 = vmatprep.mubr.msk.f32.mxu0 %vm4536_vm0, %v4537_v1 }
0x19c6   : > { %4034 = vmatprep.subr.bf16.mxu0 %v4535_v0 }
0x19c9   : > { %4036 = vmatpush3.bf16.msra.mxu0 %v4035_v18 }
0x19cc   : > { %3847 = vmatmul.mubr.msk.f32.vlgmr.msra.gmra.mrb[22].mxu0 %vm742_vm1, %v2728_v19 }
0x1a97   : > { %v2980_v20 = vpop.f32.mrb[20].mxu0 }
0x1a98   : > { %v3837_v21 = vpop.f32.mrb[21].mxu0 }
0x1a9f   : > { %v3050_v22 = vpop.f32.mrb[22].mxu0 }
0x1aa0   : > { %v3051_v1 = vadd.f32 %v3050_v22, %v2980_v20  ;;  %v3848_v23 = vpop.f32.mrb[23].mxu0 }
0x1aa2   : > { %v3061_v0 = vadd.f32 %v3354_v56, %v3051_v1 }
0x1aa4   : > { %3062 = vst [vmem:[%s577_s0] sm:$0xff] %v3061_v0 }
0x1aa5   : > { %4460 = shalt.err (!%p4457_p8)
}
0x1aa6   : > { %s4461_s11 = scalar_lea.hbm %s5342_s9, 128  ;;  %s4465_s17 = scalar_lea.hbm %s5446_s20, 384 }
0x1aa7   : > { %p4462_p7 = scmp.ne.s32.totalorder %s5342_s9, %s4461_s11  ;;  %p4466_p1 = scmp.lt.u32.totalorder %s5342_s9, %s5446_s20 }
0x1aa8   : > { %p4467_p2 = scmp.lt.u32.totalorder %s4465_s17, %s4461_s11  ;;  %p4469_p5 = scmp.lt.u32.totalorder %s4461_s11, %s5342_s9 }
0x1aa9   : > { %p4463_p4 = pnand %p4462_p7, %p5447_p10 }
0x1aaa   : > { %p4468_p12 = por %p4467_p2, %p4466_p1 }
0x1aab   : > { %p4464_p0 = pneg %p4463_p4 }
0x1aac   : > { %p4470_p13 = por %p4469_p5, %p4468_p12 }
0x1aae   : > { %p4471_p6 = pnand %p4470_p13, %p4464_p0 }
0x1ab0   : > { %4474 = shalt.err (!%p4471_p6)
}
0x1ab1   : > { %4073 = dma.vmem_to_hbm [thread:$0]  (%p5447_p10), %s5344_s6, 128, %s5342_s9, %s3064_s19  }
0x1ab2 PF: > { %s5448_s25 = sld [smem:[#allocation19_spill]]  ;;  %s5449_s14 = sld [smem:[#allocation24_spill]] }
0x1ab3   : > { %p4099_p3 = scmp.ge.s32.totalorder %s4525_s12, 2 }
0x1ab8   : > { %s3089_s29 = sand.u32 1, %s5448_s25   ;;  %p5450_p9 = scmp.ne.s32.totalorder %s5449_s14, 0 }
0x1ab9   : > { %s3090_s23 = scalar_lea.sflag [#allocation4], %s3089_s29 }
0x1aba   : > { %p4095_p11 = pnand %p4099_p3, %p5450_p9 }
0x1abc   : > { %4508 = dma.done.wait (!%p4095_p11), %s3090_s23, 128  }
0x1abd   : > { %4510 = vsyncadd (!%p4095_p11), %s3090_s23, 4294967168  ;;  %s5451_s12 = sld [smem:[#allocation21_spill]]  ;;  %s5452_s22 = sld [smem:[#allocation20_spill]] }
0x1abe   : > { %s5453_s11 = sld [smem:[#allocation22_spill]]  ;;  %s5454_s30 = smov %s4517_s10 }
0x1ac3   : > { %p31_p8 = scmp.ge.s32.totalorder %s5451_s12, 5   ;;  %s5455_s10 = smov %s5452_s22 }
0x1ac5   :  { %33 = sbr.rel (!%p31_p8) target bundleno = 19 (0x13), region = 171 }
0x1acc   :  { %3095 = vsyncpa [#allocation3], 1 }
0x1acd   :  { %3097 = vsyncpa [#allocation3 + $0x1], 1 }
0x1ace   :  { %3098 = vsyncpa [#allocation6], 1 }
0x1acf   :  { %3100 = vsyncpa [#allocation6 + $0x1], 1 }
0x1ad0   :  { %3101 = vsyncpa [#allocation9], 1 }
0x1ad1   :  { %3103 = vsyncpa [#allocation9 + $0x1], 1 }
0x1ad2   :  { %3104 = vsyncpa [#allocation12], 1 }
0x1ad3   :  { %3106 = vsyncpa [#allocation12 + $0x1], 1 }
0x1ad4   :  { %3107 = vsyncpa [#allocation4], 1 }
0x1ad5   :  { %3109 = vsyncpa [#allocation4 + $0x1], 1 }

</bundles_post_ra>
